<compile_context>
chip_gen: v7x
topology: tpu7x:2x2x1
jax: 0.10.0
libtpu: 0.0.40
codegen_flags: <defaults>
</compile_context>

<pallas_src>
import functools
import math

import jax
import jax.numpy as jnp
from jax.experimental import pallas as pl
from jax.experimental.pallas import tpu as pltpu

WINDOW_SIZE = 11
SIGMA = 1.5
C1 = 0.01 ** 2
C2 = 0.03 ** 2

_VMEM_BUDGET = 24 * 1024 * 1024  # per-step working-set target (bytes)


def _gaussian_1d(window_size=WINDOW_SIZE, sigma=SIGMA):
    # Identical to gaussian() in the PyTorch module (python-float constants).
    vals = [math.exp(-((x - window_size // 2) ** 2) / (2.0 * sigma ** 2))
            for x in range(window_size)]
    s = sum(vals)
    return jnp.array([v / s for v in vals], dtype=jnp.float32)


def _band_matrix(n, g1d, pad):
    # B[i, j] = g1d[j - i + pad] (zero outside the band).  Left-multiplying an
    # (n, W) plane reproduces the zero-padded 1-D cross-correlation along
    # rows, exactly as F.conv2d with padding=pad does per axis.  The matrix is
    # symmetric (Gaussian is even), so the same construction also serves as
    # the right-multiply (horizontal) operator -- no transpose needed.
    ws = g1d.shape[0]
    idx = jnp.arange(n)
    diff = idx[None, :] - idx[:, None] + pad            # (n, n): j - i + pad
    valid = (diff >= 0) & (diff < ws)
    vals = jnp.take(g1d, jnp.clip(diff, 0, ws - 1))
    return jnp.where(valid, vals, 0.0).astype(jnp.float32)


def _vmem_estimate(p, h, w, in_itemsize):
    inputs = 2 * 2 * p * h * w * in_itemsize            # 2 inputs, double-buffered
    bands = 2 * 2 * (h * h + w * w) * 4                 # band matrices (dbl-buf)
    work = 10 * 5 * p * h * w * 4                       # live f32 intermediates
    out = 2 * p * 4
    return inputs + bands + work + out


def _planes_per_step(nc, h, w, in_itemsize):
    # Lane-density target: P*W >= 256 lanes (5*P*W after quantity stacking).
    target = max(1, -(-256 // w))
    while target > 1 and _vmem_estimate(target, h, w, in_itemsize) > _VMEM_BUDGET:
        target -= 1
    target = min(target, nc)
    # Prefer an exact divisor of nc so no dummy planes need padding.
    for p in range(target, 0, -1):
        if nc % p == 0:
            return p
    return 1


def _ssim_kernel(bv_ref, bh_ref, a_ref, b_ref, out_ref, *, matmul_dtype):
    # bv_ref : (H, H)  banded vertical Gaussian (same block every step)
    # bh_ref : (W, W)  banded horizontal Gaussian
    # a_ref  : (P, H, W) P planes of img1 for this grid step
    # b_ref  : (P, H, W) P planes of img2
    # out_ref: (1, P)  per-plane sums of ssim_map
    a = a_ref[...].astype(jnp.float32)   # cast in VMEM, HBM stays native dtype
    b = b_ref[...].astype(jnp.float32)
    p, h, w = a.shape

    bv = bv_ref[...].astype(matmul_dtype)
    bh = bh_ref[...].astype(matmul_dtype)

    # Five blur operands, formed once per plane (VPU elementwise).
    quants = (a, b, a * a, b * b, a * b)                      # 5 x (P, H, W)

    # ---- fused vertical blur: one (H, H) @ (H, 5*P*W) MXU matmul ----------
    # Lane-stack the 5*P planes; chunk index i = q*P + plane.
    x1 = jnp.concatenate([q[i] for q in quants for i in range(p)], axis=-1)
    t = jnp.dot(bv, x1.astype(matmul_dtype),
                preferred_element_type=jnp.float32)           # (H, 5*P*W)

    # ---- fused horizontal blur: one (5*P*H, W) @ (W, W) MXU matmul --------
    # Restack the lane chunks along sublanes (plain VMEM copies, no transpose).
    y = jnp.concatenate([t[:, i * w:(i + 1) * w] for i in range(5 * p)], axis=0)
    z = jnp.dot(y.astype(matmul_dtype), bh,
                preferred_element_type=jnp.float32)           # (5*P*H, W)

    blurred = z.reshape(5, p, h, w)
    mu1 = blurred[0]
    mu2 = blurred[1]
    s11 = blurred[2]
    s22 = blurred[3]
    s12 = blurred[4]

    mu1_sq = mu1 * mu1
    mu2_sq = mu2 * mu2
    mu1_mu2 = mu1 * mu2
    sigma1_sq = s11 - mu1_sq
    sigma2_sq = s22 - mu2_sq
    sigma12 = s12 - mu1_mu2

    num = (2.0 * mu1_mu2 + C1) * (2.0 * sigma12 + C2)
    den = (mu1_sq + mu2_sq + C1) * (sigma1_sq + sigma2_sq + C2)
    ssim_map = num / den                                      # (P, H, W)

    row = jnp.sum(ssim_map, axis=-1)                          # (P, H)
    out_ref[...] = jnp.sum(row, axis=-1)[None, :]             # (1, P)


def ssim_pallas(img1, img2, window_size=WINDOW_SIZE, size_average=True,
                matmul_dtype=jnp.float32):
    assert img1.shape == img2.shape and img1.ndim == 4
    N, C, H, W = img1.shape
    pad = window_size // 2

    g1d = _gaussian_1d(window_size, SIGMA)
    bv = _band_matrix(H, g1d, pad)   # (H, H)
    bh = _band_matrix(W, g1d, pad)   # (W, W); symmetric -> no transpose needed

    nc = N * C
    itemsize = jnp.dtype(img1.dtype).itemsize
    p = _planes_per_step(nc, H, W, itemsize)
    g = -(-nc // p)
    nc_pad = g * p

    a = img1.reshape(nc, H, W)
    b = img2.reshape(nc, H, W)
    if nc_pad != nc:
        cfg = ((0, nc_pad - nc), (0, 0), (0, 0))
        a = jnp.pad(a, cfg)
        b = jnp.pad(b, cfg)

    est = _vmem_estimate(p, H, W, itemsize)
    vmem_limit = None
    if est > 16 * 1024 * 1024:
        vmem_limit = int(min(100 * 1024 * 1024, 2 * est))

    kernel = functools.partial(_ssim_kernel, matmul_dtype=matmul_dtype)
    plane_sums = pl.pallas_call(
        kernel,
        out_shape=jax.ShapeDtypeStruct((g, 1, p), jnp.float32),
        grid_spec=pltpu.PrefetchScalarGridSpec(
            num_scalar_prefetch=0,
            grid=(g,),
            in_specs=[
                # Band matrices: full arrays, same block every step.
                pl.BlockSpec((H, H), lambda i: (0, 0)),
                pl.BlockSpec((W, W), lambda i: (0, 0)),
                # P unpadded planes per grid step.
                pl.BlockSpec((p, H, W), lambda i: (i, 0, 0)),
                pl.BlockSpec((p, H, W), lambda i: (i, 0, 0)),
            ],
            # Lane-dense row of per-plane sums; no cross-step dependency.
            out_specs=pl.BlockSpec((None, 1, p), lambda i: (i, 0, 0)),
        ),
        compiler_params=pltpu.CompilerParams(
            dimension_semantics=("parallel",),
            vmem_limit_bytes=vmem_limit),
    )(bv, bh, a, b)

    plane_sums = plane_sums.reshape(g * p)[:nc].reshape(N, C)
    if size_average:
        return jnp.sum(plane_sums) / jnp.float32(N * C * H * W)
    # size_average=False: torch's ssim_map.mean(1).mean(1).mean(1) == per-image
    # mean over (C, H, W).
    return jnp.sum(plane_sums, axis=1) / jnp.float32(C * H * W)


def _ssim_map_ref(img1, img2, window_size=WINDOW_SIZE):
    # Pure-JAX reference mirroring the PyTorch _ssim for verification.
    N, C, H, W = img1.shape
    pad = window_size // 2
    g1d = _gaussian_1d(window_size, SIGMA)
    window = jnp.outer(g1d, g1d)
    w = jnp.broadcast_to(window[None, None], (C, 1, window_size, window_size))

    def conv(x):
        return jax.lax.conv_general_dilated(
            x, w, window_strides=(1, 1), padding=[(pad, pad), (pad, pad)],
            feature_group_count=C, dimension_numbers=("NCHW", "OIHW", "NCHW"))

    mu1 = conv(img1)
    mu2 = conv(img2)
    mu1_sq, mu2_sq, mu1_mu2 = mu1 * mu1, mu2 * mu2, mu1 * mu2
    sigma1_sq = conv(img1 * img1) - mu1_sq
    sigma2_sq = conv(img2 * img2) - mu2_sq
    sigma12 = conv(img1 * img2) - mu1_mu2
    return ((2 * mu1_mu2 + C1) * (2 * sigma12 + C2)) / (
        (mu1_sq + mu2_sq + C1) * (sigma1_sq + sigma2_sq + C2))


if __name__ == "__main__":
    key = jax.random.PRNGKey(0)
    k1, k2 = jax.random.split(key)
    N, C, H, W = 2, 4, 16, 16
    img1 = jax.random.uniform(k1, (N, C, H, W), dtype=jnp.float32)
    img2 = jnp.clip(img1 + 0.1 * jax.random.normal(k2, (N, C, H, W)), 0.0, 1.0)
    img2 = img2.astype(jnp.float32)

    out = jax.block_until_ready(ssim_pallas(img1, img2))

    ref_map = _ssim_map_ref(img1, img2)
    ref_mean = jax.block_until_ready(jnp.mean(ref_map))
    assert jnp.allclose(out, ref_mean, rtol=1e-4, atol=1e-5), (out, ref_mean)

    out_per_img = jax.block_until_ready(
        ssim_pallas(img1, img2, size_average=False))
    ref_per_img = jnp.mean(ref_map, axis=(1, 2, 3))
    assert jnp.allclose(out_per_img, ref_per_img, rtol=1e-4, atol=1e-5), (
        out_per_img, ref_per_img)

    print("KERNEL_OK")
</pallas_src>

<mosaic_0001>
module attributes {stable_mosaic.version = 11 : i64} {
  func.func @_ssim_kernel(%arg0: i32, %arg1: memref<16x16xf32, #tpu.memory_space<vmem>>, %arg2: memref<16x16xf32, #tpu.memory_space<vmem>>, %arg3: memref<8x16x16xf32, #tpu.memory_space<vmem>>, %arg4: memref<8x16x16xf32, #tpu.memory_space<vmem>>, %arg5: memref<1x1x8xf32, #tpu.memory_space<vmem>>) attributes {dimension_semantics = [#tpu.dimension_semantics<parallel>], iteration_bounds = array<i64: 1>, scalar_prefetch = 0 : i64, scratch_operands = 0 : i64, tpu.core_type = #tpu.core_type<tc>, window_params = [{pipeline_mode = #tpu.pipeline_mode<synchronous>, transform_indices = @transform_0, window_bounds = array<i64: 16, 16>}, {pipeline_mode = #tpu.pipeline_mode<synchronous>, transform_indices = @transform_1, window_bounds = array<i64: 16, 16>}, {transform_indices = @transform_2, window_bounds = array<i64: 8, 16, 16>}, {transform_indices = @transform_3, window_bounds = array<i64: 8, 16, 16>}, {transform_indices = @transform_4, window_bounds = array<i64: 1, 1, 8>}]} {
    %c0 = arith.constant 0 : index
    %c0_0 = arith.constant 0 : index
    %c0_1 = arith.constant 0 : index
    %0 = vector.load %arg3[%c0, %c0_0, %c0_1] : memref<8x16x16xf32, #tpu.memory_space<vmem>>, vector<8x16x16xf32>
    %c0_2 = arith.constant 0 : index
    %c0_3 = arith.constant 0 : index
    %c0_4 = arith.constant 0 : index
    %1 = vector.load %arg4[%c0_2, %c0_3, %c0_4] : memref<8x16x16xf32, #tpu.memory_space<vmem>>, vector<8x16x16xf32>
    %c0_5 = arith.constant 0 : index
    %c0_6 = arith.constant 0 : index
    %2 = vector.load %arg1[%c0_5, %c0_6] : memref<16x16xf32, #tpu.memory_space<vmem>>, vector<16x16xf32>
    %c0_7 = arith.constant 0 : index
    %c0_8 = arith.constant 0 : index
    %3 = vector.load %arg2[%c0_7, %c0_8] : memref<16x16xf32, #tpu.memory_space<vmem>>, vector<16x16xf32>
    %4 = arith.mulf %0, %0 : vector<8x16x16xf32>
    %5 = arith.mulf %1, %1 : vector<8x16x16xf32>
    %6 = arith.mulf %0, %1 : vector<8x16x16xf32>
    %7 = vector.extract_strided_slice %0 {offsets = [0, 0, 0], sizes = [1, 16, 16], strides = [1, 1, 1]} : vector<8x16x16xf32> to vector<1x16x16xf32>
    %8 = vector.shape_cast %7 : vector<1x16x16xf32> to vector<16x16xf32>
    %9 = vector.extract_strided_slice %0 {offsets = [1, 0, 0], sizes = [1, 16, 16], strides = [1, 1, 1]} : vector<8x16x16xf32> to vector<1x16x16xf32>
    %10 = vector.shape_cast %9 : vector<1x16x16xf32> to vector<16x16xf32>
    %11 = vector.extract_strided_slice %0 {offsets = [2, 0, 0], sizes = [1, 16, 16], strides = [1, 1, 1]} : vector<8x16x16xf32> to vector<1x16x16xf32>
    %12 = vector.shape_cast %11 : vector<1x16x16xf32> to vector<16x16xf32>
    %13 = vector.extract_strided_slice %0 {offsets = [3, 0, 0], sizes = [1, 16, 16], strides = [1, 1, 1]} : vector<8x16x16xf32> to vector<1x16x16xf32>
    %14 = vector.shape_cast %13 : vector<1x16x16xf32> to vector<16x16xf32>
    %15 = vector.extract_strided_slice %0 {offsets = [4, 0, 0], sizes = [1, 16, 16], strides = [1, 1, 1]} : vector<8x16x16xf32> to vector<1x16x16xf32>
    %16 = vector.shape_cast %15 : vector<1x16x16xf32> to vector<16x16xf32>
    %17 = vector.extract_strided_slice %0 {offsets = [5, 0, 0], sizes = [1, 16, 16], strides = [1, 1, 1]} : vector<8x16x16xf32> to vector<1x16x16xf32>
    %18 = vector.shape_cast %17 : vector<1x16x16xf32> to vector<16x16xf32>
    %19 = vector.extract_strided_slice %0 {offsets = [6, 0, 0], sizes = [1, 16, 16], strides = [1, 1, 1]} : vector<8x16x16xf32> to vector<1x16x16xf32>
    %20 = vector.shape_cast %19 : vector<1x16x16xf32> to vector<16x16xf32>
    %21 = vector.extract_strided_slice %0 {offsets = [7, 0, 0], sizes = [1, 16, 16], strides = [1, 1, 1]} : vector<8x16x16xf32> to vector<1x16x16xf32>
    %22 = vector.shape_cast %21 : vector<1x16x16xf32> to vector<16x16xf32>
    %23 = vector.extract_strided_slice %1 {offsets = [0, 0, 0], sizes = [1, 16, 16], strides = [1, 1, 1]} : vector<8x16x16xf32> to vector<1x16x16xf32>
    %24 = vector.shape_cast %23 : vector<1x16x16xf32> to vector<16x16xf32>
    %25 = vector.extract_strided_slice %1 {offsets = [1, 0, 0], sizes = [1, 16, 16], strides = [1, 1, 1]} : vector<8x16x16xf32> to vector<1x16x16xf32>
    %26 = vector.shape_cast %25 : vector<1x16x16xf32> to vector<16x16xf32>
    %27 = vector.extract_strided_slice %1 {offsets = [2, 0, 0], sizes = [1, 16, 16], strides = [1, 1, 1]} : vector<8x16x16xf32> to vector<1x16x16xf32>
    %28 = vector.shape_cast %27 : vector<1x16x16xf32> to vector<16x16xf32>
    %29 = vector.extract_strided_slice %1 {offsets = [3, 0, 0], sizes = [1, 16, 16], strides = [1, 1, 1]} : vector<8x16x16xf32> to vector<1x16x16xf32>
    %30 = vector.shape_cast %29 : vector<1x16x16xf32> to vector<16x16xf32>
    %31 = vector.extract_strided_slice %1 {offsets = [4, 0, 0], sizes = [1, 16, 16], strides = [1, 1, 1]} : vector<8x16x16xf32> to vector<1x16x16xf32>
    %32 = vector.shape_cast %31 : vector<1x16x16xf32> to vector<16x16xf32>
    %33 = vector.extract_strided_slice %1 {offsets = [5, 0, 0], sizes = [1, 16, 16], strides = [1, 1, 1]} : vector<8x16x16xf32> to vector<1x16x16xf32>
    %34 = vector.shape_cast %33 : vector<1x16x16xf32> to vector<16x16xf32>
    %35 = vector.extract_strided_slice %1 {offsets = [6, 0, 0], sizes = [1, 16, 16], strides = [1, 1, 1]} : vector<8x16x16xf32> to vector<1x16x16xf32>
    %36 = vector.shape_cast %35 : vector<1x16x16xf32> to vector<16x16xf32>
    %37 = vector.extract_strided_slice %1 {offsets = [7, 0, 0], sizes = [1, 16, 16], strides = [1, 1, 1]} : vector<8x16x16xf32> to vector<1x16x16xf32>
    %38 = vector.shape_cast %37 : vector<1x16x16xf32> to vector<16x16xf32>
    %39 = vector.extract_strided_slice %4 {offsets = [0, 0, 0], sizes = [1, 16, 16], strides = [1, 1, 1]} : vector<8x16x16xf32> to vector<1x16x16xf32>
    %40 = vector.shape_cast %39 : vector<1x16x16xf32> to vector<16x16xf32>
    %41 = vector.extract_strided_slice %4 {offsets = [1, 0, 0], sizes = [1, 16, 16], strides = [1, 1, 1]} : vector<8x16x16xf32> to vector<1x16x16xf32>
    %42 = vector.shape_cast %41 : vector<1x16x16xf32> to vector<16x16xf32>
    %43 = vector.extract_strided_slice %4 {offsets = [2, 0, 0], sizes = [1, 16, 16], strides = [1, 1, 1]} : vector<8x16x16xf32> to vector<1x16x16xf32>
    %44 = vector.shape_cast %43 : vector<1x16x16xf32> to vector<16x16xf32>
    %45 = vector.extract_strided_slice %4 {offsets = [3, 0, 0], sizes = [1, 16, 16], strides = [1, 1, 1]} : vector<8x16x16xf32> to vector<1x16x16xf32>
    %46 = vector.shape_cast %45 : vector<1x16x16xf32> to vector<16x16xf32>
    %47 = vector.extract_strided_slice %4 {offsets = [4, 0, 0], sizes = [1, 16, 16], strides = [1, 1, 1]} : vector<8x16x16xf32> to vector<1x16x16xf32>
    %48 = vector.shape_cast %47 : vector<1x16x16xf32> to vector<16x16xf32>
    %49 = vector.extract_strided_slice %4 {offsets = [5, 0, 0], sizes = [1, 16, 16], strides = [1, 1, 1]} : vector<8x16x16xf32> to vector<1x16x16xf32>
    %50 = vector.shape_cast %49 : vector<1x16x16xf32> to vector<16x16xf32>
    %51 = vector.extract_strided_slice %4 {offsets = [6, 0, 0], sizes = [1, 16, 16], strides = [1, 1, 1]} : vector<8x16x16xf32> to vector<1x16x16xf32>
    %52 = vector.shape_cast %51 : vector<1x16x16xf32> to vector<16x16xf32>
    %53 = vector.extract_strided_slice %4 {offsets = [7, 0, 0], sizes = [1, 16, 16], strides = [1, 1, 1]} : vector<8x16x16xf32> to vector<1x16x16xf32>
    %54 = vector.shape_cast %53 : vector<1x16x16xf32> to vector<16x16xf32>
    %55 = vector.extract_strided_slice %5 {offsets = [0, 0, 0], sizes = [1, 16, 16], strides = [1, 1, 1]} : vector<8x16x16xf32> to vector<1x16x16xf32>
    %56 = vector.shape_cast %55 : vector<1x16x16xf32> to vector<16x16xf32>
    %57 = vector.extract_strided_slice %5 {offsets = [1, 0, 0], sizes = [1, 16, 16], strides = [1, 1, 1]} : vector<8x16x16xf32> to vector<1x16x16xf32>
    %58 = vector.shape_cast %57 : vector<1x16x16xf32> to vector<16x16xf32>
    %59 = vector.extract_strided_slice %5 {offsets = [2, 0, 0], sizes = [1, 16, 16], strides = [1, 1, 1]} : vector<8x16x16xf32> to vector<1x16x16xf32>
    %60 = vector.shape_cast %59 : vector<1x16x16xf32> to vector<16x16xf32>
    %61 = vector.extract_strided_slice %5 {offsets = [3, 0, 0], sizes = [1, 16, 16], strides = [1, 1, 1]} : vector<8x16x16xf32> to vector<1x16x16xf32>
    %62 = vector.shape_cast %61 : vector<1x16x16xf32> to vector<16x16xf32>
    %63 = vector.extract_strided_slice %5 {offsets = [4, 0, 0], sizes = [1, 16, 16], strides = [1, 1, 1]} : vector<8x16x16xf32> to vector<1x16x16xf32>
    %64 = vector.shape_cast %63 : vector<1x16x16xf32> to vector<16x16xf32>
    %65 = vector.extract_strided_slice %5 {offsets = [5, 0, 0], sizes = [1, 16, 16], strides = [1, 1, 1]} : vector<8x16x16xf32> to vector<1x16x16xf32>
    %66 = vector.shape_cast %65 : vector<1x16x16xf32> to vector<16x16xf32>
    %67 = vector.extract_strided_slice %5 {offsets = [6, 0, 0], sizes = [1, 16, 16], strides = [1, 1, 1]} : vector<8x16x16xf32> to vector<1x16x16xf32>
    %68 = vector.shape_cast %67 : vector<1x16x16xf32> to vector<16x16xf32>
    %69 = vector.extract_strided_slice %5 {offsets = [7, 0, 0], sizes = [1, 16, 16], strides = [1, 1, 1]} : vector<8x16x16xf32> to vector<1x16x16xf32>
    %70 = vector.shape_cast %69 : vector<1x16x16xf32> to vector<16x16xf32>
    %71 = vector.extract_strided_slice %6 {offsets = [0, 0, 0], sizes = [1, 16, 16], strides = [1, 1, 1]} : vector<8x16x16xf32> to vector<1x16x16xf32>
    %72 = vector.shape_cast %71 : vector<1x16x16xf32> to vector<16x16xf32>
    %73 = vector.extract_strided_slice %6 {offsets = [1, 0, 0], sizes = [1, 16, 16], strides = [1, 1, 1]} : vector<8x16x16xf32> to vector<1x16x16xf32>
    %74 = vector.shape_cast %73 : vector<1x16x16xf32> to vector<16x16xf32>
    %75 = vector.extract_strided_slice %6 {offsets = [2, 0, 0], sizes = [1, 16, 16], strides = [1, 1, 1]} : vector<8x16x16xf32> to vector<1x16x16xf32>
    %76 = vector.shape_cast %75 : vector<1x16x16xf32> to vector<16x16xf32>
    %77 = vector.extract_strided_slice %6 {offsets = [3, 0, 0], sizes = [1, 16, 16], strides = [1, 1, 1]} : vector<8x16x16xf32> to vector<1x16x16xf32>
    %78 = vector.shape_cast %77 : vector<1x16x16xf32> to vector<16x16xf32>
    %79 = vector.extract_strided_slice %6 {offsets = [4, 0, 0], sizes = [1, 16, 16], strides = [1, 1, 1]} : vector<8x16x16xf32> to vector<1x16x16xf32>
    %80 = vector.shape_cast %79 : vector<1x16x16xf32> to vector<16x16xf32>
    %81 = vector.extract_strided_slice %6 {offsets = [5, 0, 0], sizes = [1, 16, 16], strides = [1, 1, 1]} : vector<8x16x16xf32> to vector<1x16x16xf32>
    %82 = vector.shape_cast %81 : vector<1x16x16xf32> to vector<16x16xf32>
    %83 = vector.extract_strided_slice %6 {offsets = [6, 0, 0], sizes = [1, 16, 16], strides = [1, 1, 1]} : vector<8x16x16xf32> to vector<1x16x16xf32>
    %84 = vector.shape_cast %83 : vector<1x16x16xf32> to vector<16x16xf32>
    %85 = vector.extract_strided_slice %6 {offsets = [7, 0, 0], sizes = [1, 16, 16], strides = [1, 1, 1]} : vector<8x16x16xf32> to vector<1x16x16xf32>
    %86 = vector.shape_cast %85 : vector<1x16x16xf32> to vector<16x16xf32>
    %87 = tpu.concatenate %8, %10, %12, %14, %16, %18, %20, %22, %24, %26, %28, %30, %32, %34, %36, %38 in 1 : vector<16x16xf32>, vector<16x16xf32>, vector<16x16xf32>, vector<16x16xf32>, vector<16x16xf32>, vector<16x16xf32>, vector<16x16xf32>, vector<16x16xf32>, vector<16x16xf32>, vector<16x16xf32>, vector<16x16xf32>, vector<16x16xf32>, vector<16x16xf32>, vector<16x16xf32>, vector<16x16xf32>, vector<16x16xf32> -> vector<16x256xf32>
    %88 = tpu.concatenate %40, %42, %44, %46, %48, %50, %52, %54, %56, %58, %60, %62, %64, %66, %68, %70 in 1 : vector<16x16xf32>, vector<16x16xf32>, vector<16x16xf32>, vector<16x16xf32>, vector<16x16xf32>, vector<16x16xf32>, vector<16x16xf32>, vector<16x16xf32>, vector<16x16xf32>, vector<16x16xf32>, vector<16x16xf32>, vector<16x16xf32>, vector<16x16xf32>, vector<16x16xf32>, vector<16x16xf32>, vector<16x16xf32> -> vector<16x256xf32>
    %89 = tpu.concatenate %72, %74, %76, %78, %80, %82, %84, %86 in 1 : vector<16x16xf32>, vector<16x16xf32>, vector<16x16xf32>, vector<16x16xf32>, vector<16x16xf32>, vector<16x16xf32>, vector<16x16xf32>, vector<16x16xf32> -> vector<16x128xf32>
    %90 = tpu.concatenate %87, %88, %89 in 1 : vector<16x256xf32>, vector<16x256xf32>, vector<16x128xf32> -> vector<16x640xf32>
    %cst = arith.constant dense<0.000000e+00> : vector<16x640xf32>
    %91 = tpu.matmul %2, %90, %cst {dimension_numbers = #tpu.dot_dimension_numbers<[1], [0], [0], [1], [0, 0, 1, 1], [], []>} : vector<16x16xf32>, vector<16x640xf32>, vector<16x640xf32> -> vector<16x640xf32>
    %92 = vector.extract_strided_slice %91 {offsets = [0, 0], sizes = [16, 16], strides = [1, 1]} : vector<16x640xf32> to vector<16x16xf32>
    %93 = vector.extract_strided_slice %91 {offsets = [0, 16], sizes = [16, 16], strides = [1, 1]} : vector<16x640xf32> to vector<16x16xf32>
    %94 = vector.extract_strided_slice %91 {offsets = [0, 32], sizes = [16, 16], strides = [1, 1]} : vector<16x640xf32> to vector<16x16xf32>
    %95 = vector.extract_strided_slice %91 {offsets = [0, 48], sizes = [16, 16], strides = [1, 1]} : vector<16x640xf32> to vector<16x16xf32>
    %96 = vector.extract_strided_slice %91 {offsets = [0, 64], sizes = [16, 16], strides = [1, 1]} : vector<16x640xf32> to vector<16x16xf32>
    %97 = vector.extract_strided_slice %91 {offsets = [0, 80], sizes = [16, 16], strides = [1, 1]} : vector<16x640xf32> to vector<16x16xf32>
    %98 = vector.extract_strided_slice %91 {offsets = [0, 96], sizes = [16, 16], strides = [1, 1]} : vector<16x640xf32> to vector<16x16xf32>
    %99 = vector.extract_strided_slice %91 {offsets = [0, 112], sizes = [16, 16], strides = [1, 1]} : vector<16x640xf32> to vector<16x16xf32>
    %100 = vector.extract_strided_slice %91 {offsets = [0, 128], sizes = [16, 16], strides = [1, 1]} : vector<16x640xf32> to vector<16x16xf32>
    %101 = vector.extract_strided_slice %91 {offsets = [0, 144], sizes = [16, 16], strides = [1, 1]} : vector<16x640xf32> to vector<16x16xf32>
    %102 = vector.extract_strided_slice %91 {offsets = [0, 160], sizes = [16, 16], strides = [1, 1]} : vector<16x640xf32> to vector<16x16xf32>
    %103 = vector.extract_strided_slice %91 {offsets = [0, 176], sizes = [16, 16], strides = [1, 1]} : vector<16x640xf32> to vector<16x16xf32>
    %104 = vector.extract_strided_slice %91 {offsets = [0, 192], sizes = [16, 16], strides = [1, 1]} : vector<16x640xf32> to vector<16x16xf32>
    %105 = vector.extract_strided_slice %91 {offsets = [0, 208], sizes = [16, 16], strides = [1, 1]} : vector<16x640xf32> to vector<16x16xf32>
    %106 = vector.extract_strided_slice %91 {offsets = [0, 224], sizes = [16, 16], strides = [1, 1]} : vector<16x640xf32> to vector<16x16xf32>
    %107 = vector.extract_strided_slice %91 {offsets = [0, 240], sizes = [16, 16], strides = [1, 1]} : vector<16x640xf32> to vector<16x16xf32>
    %108 = vector.extract_strided_slice %91 {offsets = [0, 256], sizes = [16, 16], strides = [1, 1]} : vector<16x640xf32> to vector<16x16xf32>
    %109 = vector.extract_strided_slice %91 {offsets = [0, 272], sizes = [16, 16], strides = [1, 1]} : vector<16x640xf32> to vector<16x16xf32>
    %110 = vector.extract_strided_slice %91 {offsets = [0, 288], sizes = [16, 16], strides = [1, 1]} : vector<16x640xf32> to vector<16x16xf32>
    %111 = vector.extract_strided_slice %91 {offsets = [0, 304], sizes = [16, 16], strides = [1, 1]} : vector<16x640xf32> to vector<16x16xf32>
    %112 = vector.extract_strided_slice %91 {offsets = [0, 320], sizes = [16, 16], strides = [1, 1]} : vector<16x640xf32> to vector<16x16xf32>
    %113 = vector.extract_strided_slice %91 {offsets = [0, 336], sizes = [16, 16], strides = [1, 1]} : vector<16x640xf32> to vector<16x16xf32>
    %114 = vector.extract_strided_slice %91 {offsets = [0, 352], sizes = [16, 16], strides = [1, 1]} : vector<16x640xf32> to vector<16x16xf32>
    %115 = vector.extract_strided_slice %91 {offsets = [0, 368], sizes = [16, 16], strides = [1, 1]} : vector<16x640xf32> to vector<16x16xf32>
    %116 = vector.extract_strided_slice %91 {offsets = [0, 384], sizes = [16, 16], strides = [1, 1]} : vector<16x640xf32> to vector<16x16xf32>
    %117 = vector.extract_strided_slice %91 {offsets = [0, 400], sizes = [16, 16], strides = [1, 1]} : vector<16x640xf32> to vector<16x16xf32>
    %118 = vector.extract_strided_slice %91 {offsets = [0, 416], sizes = [16, 16], strides = [1, 1]} : vector<16x640xf32> to vector<16x16xf32>
    %119 = vector.extract_strided_slice %91 {offsets = [0, 432], sizes = [16, 16], strides = [1, 1]} : vector<16x640xf32> to vector<16x16xf32>
    %120 = vector.extract_strided_slice %91 {offsets = [0, 448], sizes = [16, 16], strides = [1, 1]} : vector<16x640xf32> to vector<16x16xf32>
    %121 = vector.extract_strided_slice %91 {offsets = [0, 464], sizes = [16, 16], strides = [1, 1]} : vector<16x640xf32> to vector<16x16xf32>
    %122 = vector.extract_strided_slice %91 {offsets = [0, 480], sizes = [16, 16], strides = [1, 1]} : vector<16x640xf32> to vector<16x16xf32>
    %123 = vector.extract_strided_slice %91 {offsets = [0, 496], sizes = [16, 16], strides = [1, 1]} : vector<16x640xf32> to vector<16x16xf32>
    %124 = vector.extract_strided_slice %91 {offsets = [0, 512], sizes = [16, 16], strides = [1, 1]} : vector<16x640xf32> to vector<16x16xf32>
    %125 = vector.extract_strided_slice %91 {offsets = [0, 528], sizes = [16, 16], strides = [1, 1]} : vector<16x640xf32> to vector<16x16xf32>
    %126 = vector.extract_strided_slice %91 {offsets = [0, 544], sizes = [16, 16], strides = [1, 1]} : vector<16x640xf32> to vector<16x16xf32>
    %127 = vector.extract_strided_slice %91 {offsets = [0, 560], sizes = [16, 16], strides = [1, 1]} : vector<16x640xf32> to vector<16x16xf32>
    %128 = vector.extract_strided_slice %91 {offsets = [0, 576], sizes = [16, 16], strides = [1, 1]} : vector<16x640xf32> to vector<16x16xf32>
    %129 = vector.extract_strided_slice %91 {offsets = [0, 592], sizes = [16, 16], strides = [1, 1]} : vector<16x640xf32> to vector<16x16xf32>
    %130 = vector.extract_strided_slice %91 {offsets = [0, 608], sizes = [16, 16], strides = [1, 1]} : vector<16x640xf32> to vector<16x16xf32>
    %131 = vector.extract_strided_slice %91 {offsets = [0, 624], sizes = [16, 16], strides = [1, 1]} : vector<16x640xf32> to vector<16x16xf32>
    %132 = tpu.concatenate %92, %93, %94, %95, %96, %97, %98, %99, %100, %101, %102, %103, %104, %105, %106, %107 in 0 : vector<16x16xf32>, vector<16x16xf32>, vector<16x16xf32>, vector<16x16xf32>, vector<16x16xf32>, vector<16x16xf32>, vector<16x16xf32>, vector<16x16xf32>, vector<16x16xf32>, vector<16x16xf32>, vector<16x16xf32>, vector<16x16xf32>, vector<16x16xf32>, vector<16x16xf32>, vector<16x16xf32>, vector<16x16xf32> -> vector<256x16xf32>
    %133 = tpu.concatenate %108, %109, %110, %111, %112, %113, %114, %115, %116, %117, %118, %119, %120, %121, %122, %123 in 0 : vector<16x16xf32>, vector<16x16xf32>, vector<16x16xf32>, vector<16x16xf32>, vector<16x16xf32>, vector<16x16xf32>, vector<16x16xf32>, vector<16x16xf32>, vector<16x16xf32>, vector<16x16xf32>, vector<16x16xf32>, vector<16x16xf32>, vector<16x16xf32>, vector<16x16xf32>, vector<16x16xf32>, vector<16x16xf32> -> vector<256x16xf32>
    %134 = tpu.concatenate %124, %125, %126, %127, %128, %129, %130, %131 in 0 : vector<16x16xf32>, vector<16x16xf32>, vector<16x16xf32>, vector<16x16xf32>, vector<16x16xf32>, vector<16x16xf32>, vector<16x16xf32>, vector<16x16xf32> -> vector<128x16xf32>
    %135 = tpu.concatenate %132, %133, %134 in 0 : vector<256x16xf32>, vector<256x16xf32>, vector<128x16xf32> -> vector<640x16xf32>
    %cst_9 = arith.constant dense<0.000000e+00> : vector<640x16xf32>
    %136 = tpu.matmul %135, %3, %cst_9 {dimension_numbers = #tpu.dot_dimension_numbers<[1], [0], [0], [1], [0, 0, 1, 1], [], []>} : vector<640x16xf32>, vector<16x16xf32>, vector<640x16xf32> -> vector<640x16xf32>
    %137 = vector.shape_cast %136 : vector<640x16xf32> to vector<5x8x16x16xf32>
    %138 = vector.extract_strided_slice %137 {offsets = [0, 0, 0, 0], sizes = [1, 8, 16, 16], strides = [1, 1, 1, 1]} : vector<5x8x16x16xf32> to vector<1x8x16x16xf32>
    %139 = vector.shape_cast %138 : vector<1x8x16x16xf32> to vector<8x16x16xf32>
    %140 = vector.extract_strided_slice %137 {offsets = [1, 0, 0, 0], sizes = [1, 8, 16, 16], strides = [1, 1, 1, 1]} : vector<5x8x16x16xf32> to vector<1x8x16x16xf32>
    %141 = vector.shape_cast %140 : vector<1x8x16x16xf32> to vector<8x16x16xf32>
    %142 = vector.extract_strided_slice %137 {offsets = [2, 0, 0, 0], sizes = [1, 8, 16, 16], strides = [1, 1, 1, 1]} : vector<5x8x16x16xf32> to vector<1x8x16x16xf32>
    %143 = vector.shape_cast %142 : vector<1x8x16x16xf32> to vector<8x16x16xf32>
    %144 = vector.extract_strided_slice %137 {offsets = [3, 0, 0, 0], sizes = [1, 8, 16, 16], strides = [1, 1, 1, 1]} : vector<5x8x16x16xf32> to vector<1x8x16x16xf32>
    %145 = vector.shape_cast %144 : vector<1x8x16x16xf32> to vector<8x16x16xf32>
    %146 = vector.extract_strided_slice %137 {offsets = [4, 0, 0, 0], sizes = [1, 8, 16, 16], strides = [1, 1, 1, 1]} : vector<5x8x16x16xf32> to vector<1x8x16x16xf32>
    %147 = vector.shape_cast %146 : vector<1x8x16x16xf32> to vector<8x16x16xf32>
    %148 = arith.mulf %139, %139 : vector<8x16x16xf32>
    %149 = arith.mulf %141, %141 : vector<8x16x16xf32>
    %150 = arith.mulf %139, %141 : vector<8x16x16xf32>
    %151 = arith.subf %143, %148 : vector<8x16x16xf32>
    %152 = arith.subf %145, %149 : vector<8x16x16xf32>
    %153 = arith.subf %147, %150 : vector<8x16x16xf32>
    %cst_10 = arith.constant 2.000000e+00 : f32
    %154 = vector.broadcast %cst_10 : f32 to vector<8x16x16xf32>
    %155 = arith.mulf %154, %150 : vector<8x16x16xf32>
    %cst_11 = arith.constant 9.99999974E-5 : f32
    %156 = vector.broadcast %cst_11 : f32 to vector<8x16x16xf32>
    %157 = arith.addf %155, %156 : vector<8x16x16xf32>
    %cst_12 = arith.constant 2.000000e+00 : f32
    %158 = vector.broadcast %cst_12 : f32 to vector<8x16x16xf32>
    %159 = arith.mulf %158, %153 : vector<8x16x16xf32>
    %cst_13 = arith.constant 8.99999984E-4 : f32
    %160 = vector.broadcast %cst_13 : f32 to vector<8x16x16xf32>
    %161 = arith.addf %159, %160 : vector<8x16x16xf32>
    %162 = arith.mulf %157, %161 : vector<8x16x16xf32>
    %163 = arith.addf %148, %149 : vector<8x16x16xf32>
    %cst_14 = arith.constant 9.99999974E-5 : f32
    %164 = vector.broadcast %cst_14 : f32 to vector<8x16x16xf32>
    %165 = arith.addf %163, %164 : vector<8x16x16xf32>
    %166 = arith.addf %151, %152 : vector<8x16x16xf32>
    %cst_15 = arith.constant 8.99999984E-4 : f32
    %167 = vector.broadcast %cst_15 : f32 to vector<8x16x16xf32>
    %168 = arith.addf %166, %167 : vector<8x16x16xf32>
    %169 = arith.mulf %165, %168 : vector<8x16x16xf32>
    %170 = arith.divf %162, %169 : vector<8x16x16xf32>
    %cst_16 = arith.constant dense<0.000000e+00> : vector<8x16xf32>
    %171 = vector.multi_reduction <add>, %170, %cst_16 [2] : vector<8x16x16xf32> to vector<8x16xf32>
    %cst_17 = arith.constant dense<0.000000e+00> : vector<8xf32>
    %172 = vector.multi_reduction <add>, %171, %cst_17 [1] : vector<8x16xf32> to vector<8xf32>
    %173 = vector.shape_cast %172 : vector<8xf32> to vector<1x8xf32>
    %c0_18 = arith.constant 0 : index
    %c0_19 = arith.constant 0 : index
    %c0_20 = arith.constant 0 : index
    %174 = vector.load %arg5[%c0_18, %c0_19, %c0_20] : memref<1x1x8xf32, #tpu.memory_space<vmem>>, vector<1x1x8xf32>
    %175 = vector.shape_cast %174 : vector<1x1x8xf32> to vector<1x8xf32>
    %176 = vector.shape_cast %173 : vector<1x8xf32> to vector<1x1x8xf32>
    tpu.vector_store %arg5[%c0_18, %c0_19, %c0_20], %176 {strides = array<i32>} : memref<1x1x8xf32, #tpu.memory_space<vmem>>, vector<1x1x8xf32>,
    return
  }
  func.func @transform_0(%arg0: i32) -> (i32, i32) {
    %c0_i32 = arith.constant 0 : i32
    %c0_i32_0 = arith.constant 0 : i32
    %c0_i32_1 = arith.constant 0 : i32
    return %c0_i32, %c0_i32_0 : i32, i32
  }
  func.func @transform_1(%arg0: i32) -> (i32, i32) {
    %c0_i32 = arith.constant 0 : i32
    %c0_i32_0 = arith.constant 0 : i32
    %c0_i32_1 = arith.constant 0 : i32
    return %c0_i32, %c0_i32_0 : i32, i32
  }
  func.func @transform_2(%arg0: i32) -> (i32, i32, i32) {
    %c0_i32 = arith.constant 0 : i32
    %c0_i32_0 = arith.constant 0 : i32
    %c0_i32_1 = arith.constant 0 : i32
    return %arg0, %c0_i32, %c0_i32_0 : i32, i32, i32
  }
  func.func @transform_3(%arg0: i32) -> (i32, i32, i32) {
    %c0_i32 = arith.constant 0 : i32
    %c0_i32_0 = arith.constant 0 : i32
    %c0_i32_1 = arith.constant 0 : i32
    return %arg0, %c0_i32, %c0_i32_0 : i32, i32, i32
  }
  func.func @transform_4(%arg0: i32) -> (i32, i32, i32) {
    %c0_i32 = arith.constant 0 : i32
    %c0_i32_0 = arith.constant 0 : i32
    %c0_i32_1 = arith.constant 0 : i32
    return %arg0, %c0_i32, %c0_i32_0 : i32, i32, i32
  }
}

</mosaic_0001>

<bundles_post_ra>
// kernel: tpu_custom_call.1
= control target key start
LH: loop header
LB: loop body
LE: loop exit
PB: predicated region body
PF: predicated region fallthrough
CT: control target
= control target key end

     0   :  { %9 = vsyncpa [#allocation3], 0  ;;  %s3854_s0 = inlined_call_operand.hbm [shape: f32[16,16], index: 0, kind: input, shape index: {}]   ;;  %s3855_s1 = inlined_call_operand.hbm [shape: f32[16,16], index: 1, kind: input, shape index: {}]   ;;  %s3856_s2 = inlined_call_operand.hbm [shape: f32[8,16,16], index: 2, kind: input, shape index: {}]   ;;  %s3857_s3 = inlined_call_operand.hbm [shape: f32[8,16,16], index: 3, kind: input, shape index: {}]   ;;  %s3858_s4 = inlined_call_operand.hbm [shape: f32[1,1,8], index: 4, kind: output, shape index: {}]  }
   0x1   :  { %10 = vsyncpa [#allocation6], 0 }
   0x2   :  { %11 = vsyncpa [#allocation9], 0 }
   0x3   :  { %12 = vsyncpa [#allocation4], 0  ;;  %s2656_s15 = smov [#allocation5]   ;;  %s2657_s17 = smov [#allocation2]  }
   0x4   :  { %s30_s16 = sshll.u32 %s2656_s15, 4  ;;  %s18_s18 = sshll.u32 %s2657_s17, 4  ;;  %s31_s16 = int_to_ptr.vmem [resolvable:$true] %s30_s16  ;;  %s2696_s18 = int_to_ptr.vmem [resolvable:$true] %s18_s18 }
   0x5   :  { %s2538_s21 = scalar_lea.hbm %s3855_s1, 256 }
   0x6   :  { %p2539_p0 = scmp.ne.s32.totalorder %s3855_s1, %s2538_s21  ;;  %p2542_p1 = scmp.lt.u32.totalorder %s2538_s21, %s3855_s1 }
   0x8   :  { %p2544_p2 = pnand %p2542_p1, %p2539_p0 }
   0xa   :  { %2547 = shalt.err (!%p2544_p2)
}
   0xb   :  { %s2548_s26 = scalar_lea.vmem %s31_s16, 256  ;;  %p2553_p4 = scmp.lt.s32.totalorder %s31_s16, %s31_s16 }
   0xc   :  { %p2549_p3 = scmp.ne.s32.totalorder %s31_s16, %s2548_s26  ;;  %p2554_p5 = scmp.lt.s32.totalorder %s2548_s26, %s2548_s26 }
   0xe   :  { %p2555_p6 = por %p2554_p5, %p2553_p4 }
  0x10   :  { %p2556_p7 = pnand %p2555_p6, %p2549_p3 }
  0x12   :  { %2559 = shalt.err (!%p2556_p7)
}
  0x13   :  { %s2658_s27 = smov 128   ;;  %s2659_s28 = smov 8  }
  0x14   :  { %36 = dma.hbm_to_vmem [thread:$0]  %s3855_s1, 256, %s31_s16, [#allocation6], %s2658_s27, %s2658_s27, %s2659_s28  }
  0x15   :  { %s2560_s7 = scalar_lea.hbm %s3854_s0, 256 }
  0x16   :  { %p2561_p8 = scmp.ne.s32.totalorder %s3854_s0, %s2560_s7  ;;  %p2564_p9 = scmp.lt.u32.totalorder %s2560_s7, %s3854_s0 }
  0x18   :  { %p2566_p10 = pnand %p2564_p9, %p2561_p8 }
  0x1a   :  { %2569 = shalt.err (!%p2566_p10)
}
  0x1b   :  { %s2570_s12 = scalar_lea.vmem %s2696_s18, 256  ;;  %p2575_p12 = scmp.lt.s32.totalorder %s2696_s18, %s2696_s18 }
  0x1c   :  { %p2571_p11 = scmp.ne.s32.totalorder %s2696_s18, %s2570_s12  ;;  %p2576_p13 = scmp.lt.s32.totalorder %s2570_s12, %s2570_s12 }
  0x1e   :  { %p2577_p0 = por %p2576_p13, %p2575_p12 }
  0x20   :  { %p2578_p1 = pnand %p2577_p0, %p2571_p11 }
  0x22   :  { %2581 = shalt.err (!%p2578_p1)
}
  0x23   :  { %24 = dma.hbm_to_vmem [thread:$0]  %s3854_s0, 256, %s2696_s18, [#allocation3], %s2658_s27, %s2658_s27, %s2659_s28  }
  0x24   :  { %s2660_s14 = smov [#allocation7]   ;;  %s2661_s16 = smov [#allocation8]  }
  0x25   :  { %s42_s15 = sshll.u32 %s2660_s14, 4  ;;  %s54_s17 = sshll.u32 %s2661_s16, 4  ;;  %s43_s15 = int_to_ptr.vmem [resolvable:$true] %s42_s15  ;;  %s2733_s17 = int_to_ptr.vmem [resolvable:$true] %s54_s17 }
  0x26   :  { %s2582_s21 = scalar_lea.hbm %s3856_s2, 2048 }
  0x27   :  { %p2583_p2 = scmp.ne.s32.totalorder %s3856_s2, %s2582_s21  ;;  %p2586_p3 = scmp.lt.u32.totalorder %s2582_s21, %s3856_s2 }
  0x29   :  { %p2588_p4 = pnand %p2586_p3, %p2583_p2 }
  0x2b   :  { %2591 = shalt.err (!%p2588_p4)
}
  0x2c   :  { %s2592_s0 = scalar_lea.vmem %s43_s15, 2048  ;;  %p2597_p6 = scmp.lt.s32.totalorder %s43_s15, %s43_s15 }
  0x2d   :  { %p2593_p5 = scmp.ne.s32.totalorder %s43_s15, %s2592_s0  ;;  %p2598_p7 = scmp.lt.s32.totalorder %s2592_s0, %s2592_s0 }
  0x2f   :  { %p2599_p8 = por %p2598_p7, %p2597_p6 }
  0x31   :  { %p2600_p9 = pnand %p2599_p8, %p2593_p5 }
  0x33   :  { %2603 = shalt.err (!%p2600_p9)
}
  0x34   :  { %48 = dma.hbm_to_vmem [thread:$0]  %s3856_s2, 2048, %s43_s15, [#allocation6], %s2658_s27, %s2658_s27, %s2659_s28  }
  0x35   :  { %s2604_s5 = scalar_lea.hbm %s3857_s3, 2048 }
  0x36   :  { %p2605_p10 = scmp.ne.s32.totalorder %s3857_s3, %s2604_s5  ;;  %p2608_p11 = scmp.lt.u32.totalorder %s2604_s5, %s3857_s3 }
  0x38   :  { %p2610_p12 = pnand %p2608_p11, %p2605_p10 }
  0x3a   :  { %2613 = shalt.err (!%p2610_p12)
}
  0x3b   :  { %s2614_s10 = scalar_lea.vmem %s2733_s17, 2048  ;;  %p2619_p0 = scmp.lt.s32.totalorder %s2733_s17, %s2733_s17 }
  0x3c   :  { %p2615_p13 = scmp.ne.s32.totalorder %s2733_s17, %s2614_s10  ;;  %p2620_p1 = scmp.lt.s32.totalorder %s2614_s10, %s2614_s10 }
  0x3e   :  { %p2621_p2 = por %p2620_p1, %p2619_p0 }
  0x40   :  { %p2622_p3 = pnand %p2621_p2, %p2615_p13 }
  0x42   :  { %2625 = shalt.err (!%p2622_p3)
}
  0x43   :  { %60 = dma.hbm_to_vmem [thread:$0]  %s3857_s3, 2048, %s2733_s17, [#allocation9], %s2658_s27, %s2658_s27, %s2659_s28  }
  0x44   :  { %2648 = dma.done.wait [#allocation3], 256  }
  0x45   :  { %2649 = vsyncadd [#allocation3], 4294967040 }
  0x46   :  { %2650 = dma.done.wait [#allocation6], 2304  }
  0x47   :  { %2651 = vsyncadd [#allocation6], 4294964992 }
  0x48   :  { %2652 = dma.done.wait [#allocation9], 2048  }
  0x49   :  { %2653 = vsyncadd [#allocation9], 4294965248  ;;  %v2770_v0 = vld [vmem:[#allocation8 + $0x20] sm:$0xff]  ;;  %v2772_v1 = vld [vmem:[#allocation8 + $0x28] sm:$0xff]  ;;  %s2662_s3 = smov 32   ;;  %s2663_s27 = smov 16  }
  0x4a   :  { %v2774_v2 = vld [vmem:[#allocation8 + $0x10] sm:$0xff]  ;;  %v2341_v3 = vpack.i.bf16 %v2772_v1, %v2770_v0  ;;  %v2778_v4 = vld [vmem:[#allocation8 + $0x18] sm:$0xff]  ;;  %v2780_v5 = vld [vmem:[#allocation7 + $0x20] sm:$0xff]  ;;  %s2664_s28 = smov 48   ;;  %s2665_s12 = smov 64   ;;  %v129_v35 = vmul.f32 %v2770_v0, %v2770_v0  ;;  %v130_v36 = vmul.f32 %v2772_v1, %v2772_v1  ;;  %v2669_v58 = vmov 0.0  }
  0x4b   :  { %v2782_v6 = vld [vmem:[#allocation7 + $0x28] sm:$0xff]  ;;  %v2331_v7 = vpack.i.bf16 %v2778_v4, %v2774_v2  ;;  %v2786_v8 = vld [vmem:[#allocation7 + $0x10] sm:$0xff]  ;;  %v2788_v9 = vld [vmem:[#allocation7 + $0x18] sm:$0xff]  ;;  %v127_v23 = vmul.f32 %v2774_v2, %v2774_v2  ;;  %v128_v24 = vmul.f32 %v2778_v4, %v2778_v4  ;;  %s2666_s1 = smov 80   ;;  %s2667_s13 = smov 96   ;;  %v113_v50 = vmul.f32 %v2780_v5, %v2780_v5  ;;  %584 = vmatprep.mubr.f32.mxu0 %v2669_v58 }
  0x4c   :  { %2342 = vrot.lane.b32.xlu1 %v2341_v3, %s2662_s3  ;;  %v2346_v10 = vpack.i.bf16 %v2782_v6, %v2780_v5  ;;  %v2336_v11 = vpack.i.bf16 %v2788_v9, %v2786_v8  ;;  %v2796_v12 = vld [vmem:[#allocation7 + $0x30] sm:$0xff]  ;;  %v2798_v13 = vld [vmem:[#allocation7 + $0x38] sm:$0xff]  ;;  %v2810_v18 = vld [vmem:[#allocation7 + $0x40] sm:$0xff]  ;;  %v111_v38 = vmul.f32 %v2786_v8, %v2786_v8  ;;  %v112_v39 = vmul.f32 %v2788_v9, %v2788_v9  ;;  %s2668_s14 = smov 112   ;;  %s2670_s15 = smov [#allocation10]  }
  0x4d   :  { %2332 = vrot.lane.b32.xlu0 %v2331_v7, %s2663_s27  ;;  %v2800_v14 = vld [vmem:[#allocation8 + $0x30] sm:$0xff]  ;;  %v2802_v15 = vld [vmem:[#allocation8 + $0x38] sm:$0xff]  ;;  %v2356_v16 = vpack.i.bf16 %v2798_v13, %v2796_v12  ;;  %v2812_v19 = vld [vmem:[#allocation7 + $0x48] sm:$0xff]  ;;  %v2376_v28 = vpack.i.bf16 %v128_v24, %v127_v23  ;;  %v2396_v40 = vpack.i.bf16 %v130_v36, %v129_v35  ;;  %v114_v51 = vmul.f32 %v2782_v6, %v2782_v6  ;;  %s1984_s16 = sshll.u32 %s2670_s15, 4  ;;  %s1985_s16 = int_to_ptr.vmem [resolvable:$true] %s1984_s16 }
  0x4e   :  { %v2351_v17 = vpack.i.bf16 %v2802_v15, %v2800_v14  ;;  %v2814_v20 = vld [vmem:[#allocation8 + $0x40] sm:$0xff]  ;;  %v2816_v21 = vld [vmem:[#allocation8 + $0x48] sm:$0xff]  ;;  %v2366_v22 = vpack.i.bf16 %v2812_v19, %v2810_v18  ;;  %v2828_v26 = vld [vmem:[#allocation8 + $0x50] sm:$0xff]  ;;  %v2391_v41 = vpack.i.bf16 %v112_v39, %v111_v38  ;;  %v131_v47 = vmul.f32 %v2800_v14, %v2800_v14  ;;  %661 = vmatprep.mubr.f32.mxu1 %v2669_v58  ;;  %s2626_s17 = scalar_lea.vmem %s1985_s16, 16  ;;  %s2630_s19 = scalar_lea.vmem %s1985_s16, 32 }
  0x4f   :  { %v2361_v25 = vpack.i.bf16 %v2816_v21, %v2814_v20  ;;  %v2830_v27 = vld [vmem:[#allocation8 + $0x58] sm:$0xff]  ;;  %v2836_v30 = vld [vmem:[#allocation8 + $0x60] sm:$0xff]  ;;  %v2838_v31 = vld [vmem:[#allocation8 + $0x68] sm:$0xff]  ;;  %v132_v48 = vmul.f32 %v2802_v15, %v2802_v15  ;;  %v115_v53 = vmul.f32 %v2796_v12, %v2796_v12  ;;  %v116_v54 = vmul.f32 %v2798_v13, %v2798_v13  ;;  %p2627_p4 = scmp.ne.s32.totalorder %s1985_s16, %s2626_s17  ;;  %p2631_p5 = scmp.lt.s32.totalorder %s1985_s16, %s1985_s16 }
  0x50   :  { %2347 = vrot.lane.b32.xlu1 %v2346_v10, %s2662_s3  ;;  %v2371_v29 = vpack.i.bf16 %v2830_v27, %v2828_v26  ;;  %v2840_v32 = vld [vmem:[#allocation7 + $0x50] sm:$0xff]  ;;  %v2842_v33 = vld [vmem:[#allocation7 + $0x58] sm:$0xff]  ;;  %v2386_v34 = vpack.i.bf16 %v2838_v31, %v2836_v30  ;;  %v2864_v44 = vld [vmem:[#allocation7 + $0x60] sm:$0xff]  ;;  %v2411_v55 = vpack.i.bf16 %v114_v51, %v113_v50  ;;  %v117_v60 = vmul.f32 %v2810_v18, %v2810_v18  ;;  %p2632_p6 = scmp.lt.s32.totalorder %s2630_s19, %s2626_s17 }
  0x51   :  { %2337 = vrot.lane.b32.xlu0 %v2336_v11, %s2663_s27  ;;  %v2381_v37 = vpack.i.bf16 %v2842_v33, %v2840_v32  ;;  %v2860_v42 = vld [vmem:[#allocation8 + $0x70] sm:$0xff]  ;;  %v2862_v43 = vld [vmem:[#allocation8 + $0x78] sm:$0xff]  ;;  %v2866_v45 = vld [vmem:[#allocation7 + $0x68] sm:$0xff]  ;;  %v2416_v52 = vpack.i.bf16 %v132_v48, %v131_v47  ;;  %v2426_v59 = vpack.i.bf16 %v116_v54, %v115_v53  ;;  %v118_v61 = vmul.f32 %v2812_v19, %v2812_v19 }
  0x52   :  { %v2406_v46 = vpack.i.bf16 %v2862_v43, %v2860_v42  ;;  %v2401_v49 = vpack.i.bf16 %v2866_v45, %v2864_v44  ;;  %v2888_v56 = vld [vmem:[#allocation7 + $0x70] sm:$0xff]  ;;  %v2890_v57 = vld [vmem:[#allocation7 + $0x78] sm:$0xff]  ;;  %v133_v63 = vmul.f32 %v2814_v20, %v2814_v20  ;;  %v134_v3 = vmul.f32 %v2816_v21, %v2816_v21  ;;  %v2983_v54 = vld [vmem:[#allocation8] sm:$0xff]  ;;  %p2633_p7 = por %p2632_p6, %p2631_p5 }
  0x53   :  { %v2421_v62 = vpack.i.bf16 %v2890_v57, %v2888_v56  ;;  %v2436_v7 = vpack.i.bf16 %v118_v61, %v117_v60  ;;  %v119_v10 = vmul.f32 %v2840_v32, %v2840_v32  ;;  %v120_v11 = vmul.f32 %v2842_v33, %v2842_v33 }
  0x54   :  { %2357 = vrot.lane.b32.xlu1 %v2356_v16, %s2664_s28  ;;  %v2431_v16 = vpack.i.bf16 %v134_v3, %v133_v63  ;;  %v121_v24 = vmul.f32 %v2864_v44, %v2864_v44  ;;  %v123_v36 = vmul.f32 %v2888_v56, %v2888_v56  ;;  %v139_v39 = vmul.f32 %v2860_v42, %v2860_v42  ;;  %p2634_p8 = pnand %p2633_p7, %p2627_p4 }
  0x55   :  { %2352 = vrot.lane.b32.xlu0 %v2351_v17, %s2664_s28  ;;  %v135_v17 = vmul.f32 %v2828_v26, %v2828_v26  ;;  %v2446_v23 = vpack.i.bf16 %v120_v11, %v119_v10  ;;  %v146_v47 = vmul.f32 %v2772_v1, %v2782_v6  ;;  %v144_v50 = vmul.f32 %v2778_v4, %v2788_v9 }
  0x56   :  { %v153_v6 = vmul.f32 %v2836_v30, %v2864_v44  ;;  %vm269_vm0 = vcmask 130048   ;;  %vm272_vm1 = vcmask 261120   ;;  %vm275_vm2 = vcmask 392192  }
  0x57   :  { %vm278_vm3 = vcmask 523264   ;;  %vm281_vm4 = vcmask 654336   ;;  %vm284_vm5 = vcmask 785408   ;;  %vm287_vm6 = vcmask 916480  }
  0x58   :  { %2367 = vrot.lane.b32.xlu1 %v2366_v22, %s2665_s12  ;;  %v136_v22 = vmul.f32 %v2830_v27, %v2830_v27  ;;  %vm1887_vm7 = vcmask 130112   ;;  %vm1952_vm8 = vcmask 1041409   ;;  %vm1954_vm9 = vcmask 1042434  }
  0x59   :  { %2362 = vrot.lane.b32.xlu0 %v2361_v25, %s2665_s12  ;;  %v122_v25 = vmul.f32 %v2866_v45, %v2866_v45  ;;  %vm1956_vm10 = vcmask 1043459   ;;  %vm1958_vm11 = vcmask 1044484   ;;  %vm1960_vm12 = vcmask 1045509  }
  0x5a   :  { %vm1962_vm13 = vcmask 1046534   ;;  %vm1964_vm14 = vcmask 1047559   ;;  %vm1976_vm15 = vcmask 57344  }
  0x5b   :  { %v2456_v35 = vpack.i.bf16 %v122_v25, %v121_v24 }
  0x5c   :  { %2377 = vrot.lane.b32.xlu1 %v2376_v28, %s2663_s27  ;;  %v2441_v28 = vpack.i.bf16 %v136_v22, %v135_v17 }
  0x5d   :  { %2372 = vrot.lane.b32.xlu0 %v2371_v29, %s2666_s1  ;;  %v137_v29 = vmul.f32 %v2836_v30, %v2836_v30 }
  0x60   :  { %2387 = vrot.lane.b32.xlu1 %v2386_v34, %s2667_s13  ;;  %v138_v34 = vmul.f32 %v2838_v31, %v2838_v31 }
  0x61   :  { %2382 = vrot.lane.b32.xlu0 %v2381_v37, %s2666_s1  ;;  %v124_v37 = vmul.f32 %v2890_v57, %v2890_v57 }
  0x62   :  { %v2451_v38 = vpack.i.bf16 %v138_v34, %v137_v29 }
  0x64   :  { %2397 = vrot.lane.b32.xlu1 %v2396_v40, %s2662_s3  ;;  %v140_v40 = vmul.f32 %v2862_v43, %v2862_v43 }
  0x65   :  { %2392 = vrot.lane.b32.xlu0 %v2391_v41, %s2663_s27  ;;  %v2466_v41 = vpack.i.bf16 %v124_v37, %v123_v36  ;;  %v3001_v37 = vld [vmem:[#allocation7] sm:$0xff] }
  0x66   :  { %v2461_v48 = vpack.i.bf16 %v140_v40, %v139_v39 }
  0x68   :  { %2407 = vrot.lane.b32.xlu1 %v2406_v46, %s2668_s14  ;;  %v145_v46 = vmul.f32 %v2770_v0, %v2780_v5  ;;  %v150_v0 = vmul.f32 %v2816_v21, %v2812_v19  ;;  %v147_v5 = vmul.f32 %v2800_v14, %v2796_v12  ;;  %v152_v12 = vmul.f32 %v2830_v27, %v2842_v33 }
  0x69   :  { %2402 = vrot.lane.b32.xlu0 %v2401_v49, %s2667_s13  ;;  %v143_v49 = vmul.f32 %v2774_v2, %v2786_v8  ;;  %v148_v2 = vmul.f32 %v2802_v15, %v2798_v13  ;;  %v154_v8 = vmul.f32 %v2838_v31, %v2866_v45  ;;  %v155_v15 = vmul.f32 %v2860_v42, %v2888_v56 }
  0x6a   :  { %v2476_v51 = vpack.i.bf16 %v146_v47, %v145_v46  ;;  %v156_v19 = vmul.f32 %v2862_v43, %v2890_v57 }
  0x6b   :  { %v2471_v1 = vpack.i.bf16 %v144_v50, %v143_v49  ;;  %v2481_v9 = vpack.i.bf16 %v148_v2, %v147_v5  ;;  %v2496_v13 = vpack.i.bf16 %v154_v8, %v153_v6 }
  0x6c   :  { %2417 = vrot.lane.b32.xlu1 %v2416_v52, %s2664_s28  ;;  %v149_v52 = vmul.f32 %v2814_v20, %v2810_v18  ;;  %v151_v18 = vmul.f32 %v2828_v26, %v2840_v32  ;;  %v2501_v20 = vpack.i.bf16 %v156_v19, %v155_v15 }
  0x6d   :  { %2412 = vrot.lane.b32.xlu0 %v2411_v55, %s2662_s3  ;;  %v2985_v55 = vld [vmem:[#allocation8 + $0x8] sm:$0xff] }
  0x6e   :  { %v2486_v4 = vpack.i.bf16 %v150_v0, %v149_v52  ;;  %v2491_v14 = vpack.i.bf16 %v152_v12, %v151_v18 }
  0x70   :  { %2427 = vrot.lane.b32.xlu1 %v2426_v59, %s2664_s28 }
  0x71   :  { %2422 = vrot.lane.b32.xlu0 %v2421_v62, %s2668_s14 }
  0x74   :  { %2437 = vrot.lane.b32.xlu1 %v2436_v7, %s2665_s12 }
  0x75   :  { %2432 = vrot.lane.b32.xlu0 %v2431_v16, %s2665_s12 }
  0x78   :  { %2447 = vrot.lane.b32.xlu1 %v2446_v23, %s2666_s1 }
  0x79   :  { %2442 = vrot.lane.b32.xlu0 %v2441_v28, %s2666_s1 }
  0x7c   :  { %2457 = vrot.lane.b32.xlu1 %v2456_v35, %s2667_s13 }
  0x7d   :  { %2452 = vrot.lane.b32.xlu0 %v2451_v38, %s2667_s13 }
  0x80   :  { %2467 = vrot.lane.b32.xlu1 %v2466_v41, %s2668_s14  ;;  %v3005_v41 = vld [vmem:[#allocation7 + $0x8] sm:$0xff] }
  0x81   :  { %2462 = vrot.lane.b32.xlu0 %v2461_v48, %s2668_s14 }
  0x84   :  { %2477 = vrot.lane.b32.xlu1 %v2476_v51, %s2662_s3 }
  0x85   :  { %2472 = vrot.lane.b32.xlu0 %v2471_v1, %s2663_s27 }
  0x88   :  { %2487 = vrot.lane.b32.xlu1 %v2486_v4, %s2665_s12 }
  0x89   :  { %2482 = vrot.lane.b32.xlu0 %v2481_v9, %s2664_s28 }
  0x8c   :  { %2497 = vrot.lane.b32.xlu1 %v2496_v13, %s2667_s13 }
  0x8d   :  { %2492 = vrot.lane.b32.xlu0 %v2491_v14, %s2666_s1 }
  0x91   :  { %2502 = vrot.lane.b32.xlu0 %v2501_v20, %s2668_s14 }
  0xbe   :  { %v2343_v21 = vpop.permute.xlu1 %2342 }
  0xbf   :  { %v2333_v26 = vpop.permute.xlu0 %2332  ;;  %v2345_v59 = vunpack.i.h.bf16 %v2343_v21  ;;  %v2344_v60 = vunpack.i.l.bf16 %v2343_v21 }
  0xc0   :  { %v2335_v45 = vunpack.i.h.bf16 %v2333_v26  ;;  %v2334_v53 = vunpack.i.l.bf16 %v2333_v26 }
  0xc2   :  { %v2975_v27 = vpop.permute.xlu1 %2347  ;;  %v290_v61 = vsel %vm269_vm0, %v2983_v54, %v2334_v53  ;;  %v291_v62 = vsel %vm269_vm0, %v2985_v55, %v2335_v45 }
  0xc3   :  { %v2338_v30 = vpop.permute.xlu0 %2337  ;;  %v292_v23 = vsel %vm272_vm1, %v290_v61, %v2344_v60  ;;  %v293_v24 = vsel %vm272_vm1, %v291_v62, %v2345_v59  ;;  %v2350_v51 = vunpack.i.h.bf16 %v2975_v27  ;;  %v2349_v1 = vunpack.i.l.bf16 %v2975_v27 }
  0xc4   :  { %v2339_v29 = vunpack.i.l.bf16 %v2338_v30  ;;  %v2340_v36 = vunpack.i.h.bf16 %v2338_v30  ;;  %v125_v60 = vmul.f32 %v2983_v54, %v2983_v54  ;;  %v126_v61 = vmul.f32 %v2985_v55, %v2985_v55 }
  0xc6   :  { %v2977_v31 = vpop.permute.xlu1 %2357  ;;  %v270_v5 = vsel %vm269_vm0, %v3001_v37, %v2339_v29  ;;  %v271_v6 = vsel %vm269_vm0, %v3005_v41, %v2340_v36 }
  0xc7   :  { %v2353_v32 = vpop.permute.xlu0 %2352  ;;  %v2360_v8 = vunpack.i.h.bf16 %v2977_v31  ;;  %v2359_v9 = vunpack.i.l.bf16 %v2977_v31  ;;  %v273_v21 = vsel %vm272_vm1, %v270_v5, %v2349_v1  ;;  %v274_v26 = vsel %vm272_vm1, %v271_v6, %v2350_v51  ;;  %v3072_v6 = vld [vmem:[#allocation2 + $0x8] sm:$0xff] }
  0xc8   :  { %v2355_v63 = vunpack.i.h.bf16 %v2353_v32  ;;  %v2354_v3 = vunpack.i.l.bf16 %v2353_v32 }
  0xc9   :  { %v276_v31 = vsel %vm275_vm2, %v273_v21, %v2359_v9  ;;  %v277_v32 = vsel %vm275_vm2, %v274_v26, %v2360_v8 }
  0xca   :  { %v2979_v33 = vpop.permute.xlu1 %2367  ;;  %v295_v34 = vsel %vm275_vm2, %v293_v24, %v2355_v63  ;;  %v294_v35 = vsel %vm275_vm2, %v292_v23, %v2354_v3 }
  0xcb   :  { %v2363_v42 = vpop.permute.xlu0 %2362  ;;  %v2370_v13 = vunpack.i.h.bf16 %v2979_v33  ;;  %v2369_v14 = vunpack.i.l.bf16 %v2979_v33 }
  0xcc   :  { %v2365_v7 = vunpack.i.h.bf16 %v2363_v42  ;;  %v2364_v10 = vunpack.i.l.bf16 %v2363_v42 }
  0xcd   :  { %v279_v33 = vsel %vm278_vm3, %v276_v31, %v2369_v14 }
  0xce   :  { %v2981_v44 = vpop.permute.xlu1 %2377  ;;  %v296_v39 = vsel %vm278_vm3, %v294_v35, %v2364_v10  ;;  %v297_v40 = vsel %vm278_vm3, %v295_v34, %v2365_v7  ;;  %v109_v35 = vmul.f32 %v3001_v37, %v3001_v37 }
  0xcf   :  { %v2373_v43 = vpop.permute.xlu0 %2372  ;;  %v2380_v3 = vunpack.i.h.bf16 %v2981_v44  ;;  %v2379_v7 = vunpack.i.l.bf16 %v2981_v44  ;;  %v110_v44 = vmul.f32 %v3005_v41, %v3005_v41 }
  0xd0   :  { %v2375_v16 = vunpack.i.h.bf16 %v2373_v43  ;;  %v2374_v17 = vunpack.i.l.bf16 %v2373_v43  ;;  %v280_v43 = vsel %vm278_vm3, %v277_v32, %v2370_v13 }
  0xd2   :  { %v2388_v56 = vpop.permute.xlu1 %2387  ;;  %v298_v49 = vsel %vm281_vm4, %v296_v39, %v2374_v17  ;;  %v299_v50 = vsel %vm281_vm4, %v297_v40, %v2375_v16  ;;  %v3053_v39 = vld [vmem:[#allocation2] sm:$0xff]  ;;  %v431_v40 = vsel %vm269_vm0, %v126_v61, %v2380_v3 }
  0xd3   :  { %v2987_v57 = vpop.permute.xlu0 %2382  ;;  %v2390_v25 = vunpack.i.h.bf16 %v2388_v56  ;;  %v2389_v28 = vunpack.i.l.bf16 %v2388_v56 }
  0xd4   :  { %v2385_v19 = vunpack.i.h.bf16 %v2987_v57  ;;  %v2384_v20 = vunpack.i.l.bf16 %v2987_v57 }
  0xd5   :  { %v300_v52 = vsel %vm284_vm5, %v298_v49, %v2389_v28  ;;  %v301_v0 = vsel %vm284_vm5, %v299_v50, %v2390_v25 }
  0xd6   :  { %v2993_v11 = vpop.permute.xlu1 %2397  ;;  %v282_v57 = vsel %vm281_vm4, %v279_v33, %v2384_v20  ;;  %v283_v59 = vsel %vm281_vm4, %v280_v43, %v2385_v19 }
  0xd7   :  { %v2995_v22 = vpop.permute.xlu0 %2392  ;;  %v2400_v23 = vunpack.i.h.bf16 %v2993_v11  ;;  %v2399_v24 = vunpack.i.l.bf16 %v2993_v11  ;;  %v430_v11 = vsel %vm269_vm0, %v125_v60, %v2379_v7 }
  0xd8   :  { %v2395_v29 = vunpack.i.h.bf16 %v2995_v22  ;;  %v2394_v34 = vunpack.i.l.bf16 %v2995_v22 }
  0xd9   :  { %v432_v22 = vsel %vm272_vm1, %v430_v11, %v2399_v24 }
  0xda   :  { %v2408_v38 = vpop.permute.xlu1 %2407 }
  0xdb   :  { %v2410_v46 = vunpack.i.h.bf16 %v2408_v38  ;;  %v2409_v47 = vunpack.i.l.bf16 %v2408_v38  ;;  %v2403_v48 = vpop.permute.xlu0 %2402 }
  0xdc   :  { %v2405_v27 = vunpack.i.h.bf16 %v2403_v48  ;;  %v2404_v30 = vunpack.i.l.bf16 %v2403_v48  ;;  %v433_v48 = vsel %vm272_vm1, %v431_v40, %v2400_v23 }
  0xdd   :  { %v302_v2 = vsel %vm287_vm6, %v300_v52, %v2409_v47  ;;  %v303_v4 = vsel %vm287_vm6, %v301_v0, %v2410_v46  ;;  %v3059_v47 = vmul.f32 %v2983_v54, %v3001_v37  ;;  %v416_v52 = vsel %vm269_vm0, %v109_v35, %v2394_v34 }
  0xde   :  { %v2418_v18 = vpop.permute.xlu1 %2417  ;;  %v2298_v12 = vpack.c.bf16 %v303_v4, %v302_v2  ;;  %v285_v62 = vsel %vm284_vm5, %v282_v57, %v2404_v30  ;;  %v286_v63 = vsel %vm284_vm5, %v283_v59, %v2405_v27  ;;  %v417_v0 = vsel %vm269_vm0, %v110_v44, %v2395_v29 }
  0xdf   :  { %v3023_v15 = vpop.permute.xlu0 %2412  ;;  %v2420_v36 = vunpack.i.h.bf16 %v2418_v18  ;;  %v2419_v38 = vunpack.i.l.bf16 %v2418_v18  ;;  %v142_v44 = vmul.f32 %v2985_v55, %v3005_v41 }
  0xe0   :  { %2299 = vmatprep.subr.bf16.mxu0 %v2298_v12  ;;  %v2415_v49 = vunpack.i.h.bf16 %v3023_v15  ;;  %v2414_v50 = vunpack.i.l.bf16 %v3023_v15 }
  0xe1   :  { %v434_v54 = vsel %vm275_vm2, %v432_v22, %v2419_v38  ;;  %v435_v37 = vsel %vm275_vm2, %v433_v48, %v2420_v36 }
  0xe2   :  { %v2428_v42 = vpop.permute.xlu1 %2427  ;;  %v418_v14 = vsel %vm272_vm1, %v416_v52, %v2414_v50  ;;  %v419_v15 = vsel %vm272_vm1, %v417_v0, %v2415_v49 }
  0xe3   :  { %v2423_v45 = vpop.permute.xlu0 %2422  ;;  %v2430_v1 = vunpack.i.h.bf16 %v2428_v42  ;;  %v2429_v5 = vunpack.i.l.bf16 %v2428_v42 }
  0xe4   :  { %v2425_v53 = vunpack.i.h.bf16 %v2423_v45  ;;  %v2424_v56 = vunpack.i.l.bf16 %v2423_v45 }
  0xe5   :  { %v420_v26 = vsel %vm275_vm2, %v418_v14, %v2429_v5  ;;  %v421_v27 = vsel %vm275_vm2, %v419_v15, %v2430_v1 }
  0xe6   :  { %v2438_v10 = vpop.permute.xlu1 %2437  ;;  %v288_v16 = vsel %vm287_vm6, %v285_v62, %v2424_v56  ;;  %v289_v17 = vsel %vm287_vm6, %v286_v63, %v2425_v53 }
  0xe7   :  { %v2433_v25 = vpop.permute.xlu0 %2432  ;;  %v2300_v28 = vpack.c.bf16 %v289_v17, %v288_v16  ;;  %v2440_v2 = vunpack.i.h.bf16 %v2438_v10  ;;  %v2439_v4 = vunpack.i.l.bf16 %v2438_v10 }
  0xe8   :  { %v2435_v8 = vunpack.i.h.bf16 %v2433_v25  ;;  %v2434_v9 = vunpack.i.l.bf16 %v2433_v25 }
  0xe9   :  { %2301 = vmatpush1.bf16.msra.mxu0 %v2300_v28  ;;  %v422_v32 = vsel %vm278_vm3, %v420_v26, %v2439_v4  ;;  %v423_v42 = vsel %vm278_vm3, %v421_v27, %v2440_v2 }
  0xea   :  { %v2448_v46 = vpop.permute.xlu1 %2447  ;;  %v436_v57 = vsel %vm278_vm3, %v434_v54, %v2434_v9  ;;  %v437_v59 = vsel %vm278_vm3, %v435_v37, %v2435_v8 }
  0xeb   :  { %v2443_v51 = vpop.permute.xlu0 %2442  ;;  %v2450_v18 = vunpack.i.h.bf16 %v2448_v46  ;;  %v2449_v12 = vunpack.i.l.bf16 %v2448_v46 }
  0xec   :  { %1995 = vmatmul.mubr.msk.f32.vlgmr.msra.gmra.mrb[0].mxu0 %vm269_vm0, %v3053_v39  ;;  %v2445_v19 = vunpack.i.h.bf16 %v2443_v51  ;;  %v2444_v20 = vunpack.i.l.bf16 %v2443_v51 }
  0xed   :  { %590 = vmatprep.mubr.f32.mxu0 %v2669_v58  ;;  %v424_v45 = vsel %vm281_vm4, %v422_v32, %v2449_v12  ;;  %v425_v53 = vsel %vm281_vm4, %v423_v42, %v2450_v18  ;;  %v107_v32 = vld [vmem:[#allocation5] sm:$0xff]  ;;  %v108_v42 = vld [vmem:[#allocation5 + $0x8] sm:$0xff] }
  0xee   :  { %v2458_v13 = vpop.permute.xlu1 %2457  ;;  %v438_v63 = vsel %vm281_vm4, %v436_v57, %v2444_v20  ;;  %v439_v3 = vsel %vm281_vm4, %v437_v59, %v2445_v19 }
  0xef   :  { %v2453_v21 = vpop.permute.xlu0 %2452  ;;  %v2460_v30 = vunpack.i.h.bf16 %v2458_v13  ;;  %v2459_v31 = vunpack.i.l.bf16 %v2458_v13 }
  0xf0   :  { %1996 = vmatmul.mubr.msk.f32.gmra.mrb[2].mxu0 %vm269_vm0, %v3072_v6  ;;  %v2455_v33 = vunpack.i.h.bf16 %v2453_v21  ;;  %v2454_v43 = vunpack.i.l.bf16 %v2453_v21 }
  0xf1   :  { %2171 = vmatprep.mubr.msk.f32.mxu0 %vm269_vm0, %v3053_v39  ;;  %v426_v16 = vsel %vm284_vm5, %v424_v45, %v2459_v31  ;;  %v427_v17 = vsel %vm284_vm5, %v425_v53, %v2460_v30 }
  0xf2   :  { %v2468_v56 = vpop.permute.xlu1 %2467  ;;  %v440_v23 = vsel %vm284_vm5, %v438_v63, %v2454_v43  ;;  %v441_v24 = vsel %vm284_vm5, %v439_v3, %v2455_v33  ;;  %v2310_v33 = vpack.c.bf16 %v108_v42, %v107_v32 }
  0xf3   :  { %v2470_v60 = vunpack.i.h.bf16 %v2468_v56  ;;  %v2469_v61 = vunpack.i.l.bf16 %v2468_v56  ;;  %v2463_v62 = vpop.permute.xlu0 %2462 }
  0xf4   :  { %v2465_v7 = vunpack.i.h.bf16 %v2463_v62  ;;  %v2464_v10 = vunpack.i.l.bf16 %v2463_v62 }
  0xf5   :  { %v428_v25 = vsel %vm287_vm6, %v426_v16, %v2469_v61  ;;  %v429_v28 = vsel %vm287_vm6, %v427_v17, %v2470_v60 }
  0xf6   :  { %v442_v29 = vsel %vm287_vm6, %v440_v23, %v2464_v10  ;;  %v443_v34 = vsel %vm287_vm6, %v441_v24, %v2465_v7  ;;  %v2304_v35 = vpack.c.bf16 %v429_v28, %v428_v25  ;;  %v2478_v36 = vpop.permute.xlu1 %2477 }
  0xf7   :  { %v2302_v38 = vpack.c.bf16 %v443_v34, %v442_v29  ;;  %v2473_v40 = vpop.permute.xlu0 %2472  ;;  %v2480_v11 = vunpack.i.h.bf16 %v2478_v36  ;;  %v2479_v46 = vunpack.i.l.bf16 %v2478_v36 }
  0xf8   :  { %v2475_v22 = vunpack.i.h.bf16 %v2473_v40  ;;  %v2474_v48 = vunpack.i.l.bf16 %v2473_v40 }
  0xf9   :  { %2303 = vmatprep.subr.bf16.mxu1 %v2302_v38 }
  0xfa   :  { %2305 = vmatpush1.bf16.msra.mxu1 %v2304_v35  ;;  %v500_v49 = vsel %vm269_vm0, %v3059_v47, %v2474_v48  ;;  %v501_v50 = vsel %vm269_vm0, %v142_v44, %v2475_v22  ;;  %v2488_v51 = vpop.permute.xlu1 %2487 }
  0xfb   :  { %v502_v52 = vsel %vm272_vm1, %v500_v49, %v2479_v46  ;;  %v503_v0 = vsel %vm272_vm1, %v501_v50, %v2480_v11  ;;  %v2483_v55 = vpop.permute.xlu0 %2482  ;;  %v2490_v41 = vunpack.i.h.bf16 %v2488_v51  ;;  %v2489_v1 = vunpack.i.l.bf16 %v2488_v51  ;;  %2314 = vmatprep.subr.bf16.mxu1 %v2310_v33 }
  0xfc   :  { %v2485_v5 = vunpack.i.h.bf16 %v2483_v55  ;;  %v2484_v54 = vunpack.i.l.bf16 %v2483_v55 }
  0xfd   :  { %1997 = vmatmul.mubr.msk.f32.vlgmr.msra.gmra.mrb[0].mxu1 %vm269_vm0, %v3053_v39 }
  0xfe   :  { %667 = vmatprep.mubr.f32.mxu1 %v2669_v58  ;;  %v504_v37 = vsel %vm275_vm2, %v502_v52, %v2484_v54  ;;  %v505_v47 = vsel %vm275_vm2, %v503_v0, %v2485_v5  ;;  %v2498_v2 = vpop.permute.xlu1 %2497  ;;  %2315 = vmatpush3.bf16.msra.mxu1 %v2310_v33 }
  0xff   :  { %v506_v4 = vsel %vm278_vm3, %v504_v37, %v2489_v1  ;;  %v507_v8 = vsel %vm278_vm3, %v505_v47, %v2490_v41  ;;  %v2493_v9 = vpop.permute.xlu0 %2492  ;;  %v2500_v18 = vunpack.i.h.bf16 %v2498_v2  ;;  %v2499_v12 = vunpack.i.l.bf16 %v2498_v2 }
 0x100   :  { %v2495_v13 = vunpack.i.h.bf16 %v2493_v9  ;;  %v2494_v14 = vunpack.i.l.bf16 %v2493_v9 }
 0x101   :  { %1998 = vmatmul.mubr.msk.f32.gmra.mrb[2].mxu1 %vm269_vm0, %v3072_v6 }
 0x102   :  { %v508_v39 = vsel %vm281_vm4, %v506_v4, %v2494_v14  ;;  %v509_v58 = vsel %vm281_vm4, %v507_v8, %v2495_v13 }
 0x103   :  { %v510_v15 = vsel %vm284_vm5, %v508_v39, %v2499_v12  ;;  %v511_v19 = vsel %vm284_vm5, %v509_v58, %v2500_v18  ;;  %v2503_v20 = vpop.permute.xlu0 %2502 }
 0x104   :  { %v2505_v21 = vunpack.i.h.bf16 %v2503_v20  ;;  %v2504_v26 = vunpack.i.l.bf16 %v2503_v20 }
 0x106   :  { %v512_v27 = vsel %vm287_vm6, %v510_v15, %v2504_v26  ;;  %v513_v30 = vsel %vm287_vm6, %v511_v19, %v2505_v21 }
 0x107   :  { %v2306_v31 = vpack.c.bf16 %v513_v30, %v512_v27 }
 0x109   :  { %2307 = vmatprep.subr.bf16.mxu0 %v2306_v31 }
 0x10a   :  { %2309 = vmatpush3.bf16.msra.mxu0 %v2306_v31 }
 0x10b   :  { %2311 = vmatprep.subr.bf16.mxu0 %v2310_v33 }
 0x10d   :  { %2172 = vmatmul.mubr.msk.f32.vlgmr.msra.gmra.mrb[4].mxu0 %vm269_vm0, %v3072_v6 }
 0x10e   :  { %2313 = vmatpush3.bf16.msra.mxu0 %v2310_v33 }
 0x1bf   :  { %v586_v43 = vpop.f32.mrb[0].mxu0 }
 0x1c0   :  { %751 = vrot.lane.b32.xlu1 %v586_v43, %s2668_s14  ;;  %v3123_v45 = vpop.f32.mrb[1].mxu0  ;;  %2178 = vmatprep.mubr.msk.f32.mxu0 %vm269_vm0, %v586_v43 }
 0x1c3   :  { %v592_v53 = vpop.f32.mrb[2].mxu0 }
 0x1c4   :  { %755 = vrot.lane.b32.xlu1 %v586_v43, %s2667_s13  ;;  %v3127_v56 = vpop.f32.mrb[3].mxu0  ;;  %2179 = vmatmul.mubr.msk.f32.vlgmr.msra.gmra.mrb[6].mxu0 %vm269_vm0, %v592_v53 }
 0x1c8   :  { %759 = vrot.lane.b32.xlu1 %v586_v43, %s2666_s1 }
 0x1cc   :  { %763 = vrot.lane.b32.xlu1 %v586_v43, %s2665_s12 }
 0x1d0   :  { %767 = vrot.lane.b32.xlu1 %v586_v43, %s2664_s28  ;;  %v3133_v6 = vpop.f32.mrb[0].mxu1 }
 0x1d1   :  { %819 = vrot.lane.b32.xlu0 %v3133_v6, %s2666_s1  ;;  %v3137_v57 = vpop.f32.mrb[1].mxu1 }
 0x1d4   :  { %771 = vrot.lane.b32.xlu1 %v586_v43, %s2662_s3  ;;  %v3140_v59 = vpop.f32.mrb[2].mxu1 }
 0x1d5   :  { %823 = vrot.lane.b32.xlu0 %v3133_v6, %s2665_s12  ;;  %v3144_v60 = vpop.f32.mrb[3].mxu1 }
 0x1d8   :  { %775 = vrot.lane.b32.xlu1 %v586_v43, %s2663_s27 }
 0x1d9   :  { %827 = vrot.lane.b32.xlu0 %v3133_v6, %s2664_s28 }
 0x1dc   :  { %781 = vrot.lane.b32.xlu1 %v3123_v45, %s2668_s14 }
 0x1dd   :  { %831 = vrot.lane.b32.xlu0 %v3133_v6, %s2662_s3 }
 0x1e0   :  { %785 = vrot.lane.b32.xlu1 %v3123_v45, %s2667_s13  ;;  %v3155_v61 = vpop.f32.mrb[4].mxu0 }
 0x1e1   :  { %835 = vrot.lane.b32.xlu0 %v3133_v6, %s2663_s27  ;;  %v3159_v62 = vpop.f32.mrb[5].mxu0 }
 0x1e4   :  { %789 = vrot.lane.b32.xlu1 %v3123_v45, %s2666_s1 }
 0x1e5   :  { %845 = vrot.lane.b32.xlu0 %v3137_v57, %s2667_s13 }
 0x1e8   :  { %793 = vrot.lane.b32.xlu1 %v3123_v45, %s2665_s12 }
 0x1e9   :  { %849 = vrot.lane.b32.xlu0 %v3137_v57, %s2666_s1 }
 0x1ec   :  { %797 = vrot.lane.b32.xlu1 %v3123_v45, %s2664_s28 }
 0x1ed   :  { %853 = vrot.lane.b32.xlu0 %v3137_v57, %s2665_s12 }
 0x1f0   :  { %801 = vrot.lane.b32.xlu1 %v3123_v45, %s2662_s3 }
 0x1f1   :  { %857 = vrot.lane.b32.xlu0 %v3137_v57, %s2664_s28 }
 0x1f4   :  { %841 = vrot.lane.b32.xlu1 %v3137_v57, %s2668_s14 }
 0x1f5   :  { %861 = vrot.lane.b32.xlu0 %v3137_v57, %s2662_s3 }
 0x1f8   :  { %757 = vrot.lane.b32.xlu1 %v592_v53, %s2667_s13 }
 0x1f9   :  { %865 = vrot.lane.b32.xlu0 %v3137_v57, %s2663_s27 }
 0x1fc   :  { %761 = vrot.lane.b32.xlu1 %v592_v53, %s2666_s1 }
 0x1fd   :  { %753 = vrot.lane.b32.xlu0 %v592_v53, %s2668_s14 }
 0x200   :  { %765 = vrot.lane.b32.xlu1 %v592_v53, %s2665_s12 }
 0x201   :  { %777 = vrot.lane.b32.xlu0 %v592_v53, %s2663_s27 }
 0x204   :  { %769 = vrot.lane.b32.xlu1 %v592_v53, %s2664_s28 }
 0x205   :  { %807 = vrot.lane.b32.xlu0 %v3127_v56, %s2663_s27 }
 0x208   :  { %773 = vrot.lane.b32.xlu1 %v592_v53, %s2662_s3 }
 0x209   :  { %821 = vrot.lane.b32.xlu0 %v3140_v59, %s2666_s1 }
 0x20c   :  { %805 = vrot.lane.b32.xlu1 %v3123_v45, %s2663_s27 }
 0x20d   :  { %825 = vrot.lane.b32.xlu0 %v3140_v59, %s2665_s12 }
 0x210   :  { %811 = vrot.lane.b32.xlu1 %v3133_v6, %s2668_s14 }
 0x211   :  { %829 = vrot.lane.b32.xlu0 %v3140_v59, %s2664_s28 }
 0x214   :  { %783 = vrot.lane.b32.xlu1 %v3127_v56, %s2668_s14 }
 0x215   :  { %833 = vrot.lane.b32.xlu0 %v3140_v59, %s2662_s3 }
 0x218   :  { %787 = vrot.lane.b32.xlu1 %v3127_v56, %s2667_s13 }
 0x219   :  { %837 = vrot.lane.b32.xlu0 %v3140_v59, %s2663_s27 }
 0x21c   :  { %791 = vrot.lane.b32.xlu1 %v3127_v56, %s2666_s1 }
 0x21d   :  { %843 = vrot.lane.b32.xlu0 %v3144_v60, %s2668_s14 }
 0x220   :  { %795 = vrot.lane.b32.xlu1 %v3127_v56, %s2665_s12 }
 0x221   :  { %847 = vrot.lane.b32.xlu0 %v3144_v60, %s2667_s13 }
 0x224   :  { %799 = vrot.lane.b32.xlu1 %v3127_v56, %s2664_s28 }
 0x225   :  { %851 = vrot.lane.b32.xlu0 %v3144_v60, %s2666_s1 }
 0x228   :  { %803 = vrot.lane.b32.xlu1 %v3127_v56, %s2662_s3 }
 0x229   :  { %855 = vrot.lane.b32.xlu0 %v3144_v60, %s2665_s12 }
 0x22c   :  { %813 = vrot.lane.b32.xlu1 %v3140_v59, %s2668_s14 }
 0x22d   :  { %859 = vrot.lane.b32.xlu0 %v3144_v60, %s2664_s28 }
 0x230   :  { %871 = vrot.lane.b32.xlu1 %v3159_v62, %s2668_s14 }
 0x231   :  { %863 = vrot.lane.b32.xlu0 %v3144_v60, %s2662_s3 }
 0x232   :  { %v752_v63 = vpop.permute.xlu1 %751 }
 0x233   :  { %2181 = vmatprep.mubr.msk.f32.mxu0 %vm269_vm0, %v752_v63 }
 0x234   :  { %815 = vrot.lane.b32.xlu1 %v3133_v6, %s2667_s13 }
 0x235   :  { %867 = vrot.lane.b32.xlu0 %v3144_v60, %s2663_s27 }
 0x236   :  { %v756_v3 = vpop.permute.xlu1 %755 }
 0x238   :  { %817 = vrot.lane.b32.xlu1 %v3140_v59, %s2667_s13 }
 0x239   :  { %873 = vrot.lane.b32.xlu0 %v3155_v61, %s2668_s14 }
 0x23a   :  { %v760_v7 = vpop.permute.xlu1 %759 }
 0x23c   :  { %883 = vrot.lane.b32.xlu1 %v3159_v62, %s2665_s12 }
 0x23d   :  { %877 = vrot.lane.b32.xlu0 %v3155_v61, %s2667_s13 }
 0x23e   :  { %v764_v10 = vpop.permute.xlu1 %763 }
 0x240   :  { %887 = vrot.lane.b32.xlu1 %v3159_v62, %s2664_s28 }
 0x241   :  { %875 = vrot.lane.b32.xlu0 %v3159_v62, %s2667_s13 }
 0x242   :  { %v768_v16 = vpop.permute.xlu1 %767 }
 0x243   :  { %v820_v17 = vpop.permute.xlu0 %819 }
 0x244   :  { %2235 = vmatprep.mubr.msk.f32.mxu1 %vm269_vm0, %v820_v17  ;;  %891 = vrot.lane.b32.xlu1 %v3159_v62, %s2662_s3 }
 0x245   :  { %879 = vrot.lane.b32.xlu0 %v3159_v62, %s2666_s1 }
 0x246   :  { %v772_v23 = vpop.permute.xlu1 %771 }
 0x247   :  { %v824_v24 = vpop.permute.xlu0 %823 }
 0x248   :  { %895 = vrot.lane.b32.xlu1 %v3159_v62, %s2663_s27 }
 0x249   :  { %881 = vrot.lane.b32.xlu0 %v3155_v61, %s2666_s1 }
 0x24a   :  { %v776_v25 = vpop.permute.xlu1 %775 }
 0x24b   :  { %v828_v28 = vpop.permute.xlu0 %827 }
 0x24d   :  { %885 = vrot.lane.b32.xlu0 %v3155_v61, %s2665_s12 }
 0x24e   :  { %v782_v29 = vpop.permute.xlu1 %781 }
 0x24f   :  { %v832_v34 = vpop.permute.xlu0 %831 }
 0x251   :  { %889 = vrot.lane.b32.xlu0 %v3155_v61, %s2664_s28 }
 0x252   :  { %v786_v35 = vpop.permute.xlu1 %785 }
 0x253   :  { %v836_v44 = vpop.permute.xlu0 %835 }
 0x255   :  { %893 = vrot.lane.b32.xlu0 %v3155_v61, %s2662_s3 }
 0x256   :  { %v3266_v36 = vpop.permute.xlu1 %789 }
 0x257   :  { %v3268_v38 = vpop.permute.xlu0 %845 }
 0x259   :  { %897 = vrot.lane.b32.xlu0 %v3155_v61, %s2663_s27 }
 0x25a   :  { %v3272_v40 = vpop.permute.xlu1 %793 }
 0x25b   :  { %v3274_v11 = vpop.permute.xlu0 %849 }
 0x25e   :  { %v3276_v46 = vpop.permute.xlu1 %797 }
 0x25f   :  { %v3278_v22 = vpop.permute.xlu0 %853 }
 0x262   :  { %v3280_v48 = vpop.permute.xlu1 %801 }
 0x263   :  { %v3282_v49 = vpop.permute.xlu0 %857 }
 0x266   :  { %v842_v50 = vpop.permute.xlu1 %841 }
 0x267   :  { %v3284_v51 = vpop.permute.xlu0 %861 }
 0x26a   :  { %v758_v52 = vpop.permute.xlu1 %757 }
 0x26b   :  { %v3286_v0 = vpop.permute.xlu0 %865 }
 0x26e   :  { %v762_v55 = vpop.permute.xlu1 %761 }
 0x26f   :  { %v754_v41 = vpop.permute.xlu0 %753 }
 0x270   :  { %2182 = vmatmul.mubr.msk.f32.gmra.mrb[8].mxu0 %vm269_vm0, %v754_v41 }
 0x271   :  { %2184 = vmatprep.mubr.msk.f32.mxu0 %vm269_vm0, %v756_v3 }
 0x272   :  { %v766_v1 = vpop.permute.xlu1 %765 }
 0x273   :  { %v778_v5 = vpop.permute.xlu0 %777 }
 0x274   :  { %2185 = vmatmul.mubr.msk.f32.gmra.mrb[10].mxu0 %vm269_vm0, %v758_v52 }
 0x275   :  { %2187 = vmatprep.mubr.msk.f32.mxu0 %vm269_vm0, %v760_v7 }
 0x276   :  { %v770_v54 = vpop.permute.xlu1 %769 }
 0x277   :  { %v3292_v37 = vpop.permute.xlu0 %807 }
 0x278   :  { %2188 = vmatmul.mubr.msk.f32.gmra.mrb[12].mxu0 %vm269_vm0, %v762_v55 }
 0x279   :  { %2190 = vmatprep.mubr.msk.f32.mxu0 %vm269_vm0, %v764_v10 }
 0x27a   :  { %v774_v47 = vpop.permute.xlu1 %773 }
 0x27b   :  { %v822_v2 = vpop.permute.xlu0 %821 }
 0x27c   :  { %2191 = vmatmul.mubr.msk.f32.gmra.mrb[14].mxu0 %vm269_vm0, %v766_v1  ;;  %2236 = vmatmul.mubr.msk.f32.vlgmr.msra.gmra.mrb[4].mxu1 %vm269_vm0, %v822_v2 }
 0x27d   :  { %2193 = vmatprep.mubr.msk.f32.mxu0 %vm269_vm0, %v768_v16  ;;  %2238 = vmatprep.mubr.msk.f32.mxu1 %vm269_vm0, %v824_v24 }
 0x27e   :  { %v806_v4 = vpop.permute.xlu1 %805 }
 0x27f   :  { %v826_v8 = vpop.permute.xlu0 %825 }
 0x280   :  { %2194 = vmatmul.mubr.msk.f32.gmra.mrb[16].mxu0 %vm269_vm0, %v770_v54  ;;  %2239 = vmatmul.mubr.msk.f32.gmra.mrb[6].mxu1 %vm269_vm0, %v826_v8 }
 0x281   :  { %2196 = vmatprep.mubr.msk.f32.mxu0 %vm269_vm0, %v772_v23  ;;  %2241 = vmatprep.mubr.msk.f32.mxu1 %vm269_vm0, %v828_v28 }
 0x282   :  { %v3304_v9 = vpop.permute.xlu1 %811 }
 0x283   :  { %v830_v18 = vpop.permute.xlu0 %829 }
 0x284   :  { %2197 = vmatmul.mubr.msk.f32.gmra.mrb[18].mxu0 %vm269_vm0, %v774_v47  ;;  %2242 = vmatmul.mubr.msk.f32.gmra.mrb[8].mxu1 %vm269_vm0, %v830_v18 }
 0x285   :  { %2199 = vmatprep.mubr.msk.f32.mxu0 %vm269_vm0, %v776_v25  ;;  %2244 = vmatprep.mubr.msk.f32.mxu1 %vm269_vm0, %v832_v34 }
 0x286   :  { %v784_v12 = vpop.permute.xlu1 %783 }
 0x287   :  { %v834_v13 = vpop.permute.xlu0 %833 }
 0x288   :  { %2200 = vmatmul.mubr.msk.f32.gmra.mrb[20].mxu0 %vm269_vm0, %v778_v5  ;;  %2245 = vmatmul.mubr.msk.f32.gmra.mrb[10].mxu1 %vm269_vm0, %v834_v13 }
 0x289   :  { %2202 = vmatprep.mubr.msk.f32.mxu0 %vm269_vm0, %v3123_v45  ;;  %2247 = vmatprep.mubr.msk.f32.mxu1 %vm269_vm0, %v836_v44 }
 0x28a   :  { %v788_v14 = vpop.permute.xlu1 %787 }
 0x28b   :  { %v838_v39 = vpop.permute.xlu0 %837 }
 0x28c   :  { %2203 = vmatmul.mubr.msk.f32.gmra.mrb[22].mxu0 %vm269_vm0, %v3127_v56  ;;  %2248 = vmatmul.mubr.msk.f32.gmra.mrb[12].mxu1 %vm269_vm0, %v838_v39 }
 0x28d   :  { %2205 = vmatprep.mubr.msk.f32.mxu0 %vm269_vm0, %v782_v29  ;;  %2250 = vmatprep.mubr.msk.f32.mxu1 %vm269_vm0, %v3137_v57 }
 0x28e   :  { %v792_v58 = vpop.permute.xlu1 %791 }
 0x28f   :  { %v844_v15 = vpop.permute.xlu0 %843 }
 0x290   :  { %2206 = vmatmul.mubr.msk.f32.gmra.mrb[24].mxu0 %vm269_vm0, %v784_v12  ;;  %2251 = vmatmul.mubr.msk.f32.gmra.mrb[14].mxu1 %vm269_vm0, %v3144_v60 }
 0x291   :  { %2208 = vmatprep.mubr.msk.f32.mxu0 %vm269_vm0, %v786_v35  ;;  %2253 = vmatprep.mubr.msk.f32.mxu1 %vm269_vm0, %v842_v50 }
 0x292   :  { %v796_v19 = vpop.permute.xlu1 %795 }
 0x293   :  { %v848_v20 = vpop.permute.xlu0 %847 }
 0x294   :  { %2209 = vmatmul.mubr.msk.f32.gmra.mrb[26].mxu0 %vm269_vm0, %v788_v14  ;;  %2254 = vmatmul.mubr.msk.f32.gmra.mrb[16].mxu1 %vm269_vm0, %v844_v15 }
 0x295   :  { %2211 = vmatprep.mubr.msk.f32.mxu0 %vm269_vm0, %v3266_v36  ;;  %2256 = vmatprep.mubr.msk.f32.mxu1 %vm269_vm0, %v3268_v38 }
 0x296   :  { %v800_v21 = vpop.permute.xlu1 %799 }
 0x297   :  { %v852_v26 = vpop.permute.xlu0 %851  ;;  %v3332_v27 = vpop.f32.mrb[6].mxu0 }
 0x298   :  { %2212 = vmatmul.mubr.msk.f32.gmra.mrb[28].mxu0 %vm269_vm0, %v792_v58  ;;  %2257 = vmatmul.mubr.msk.f32.gmra.mrb[18].mxu1 %vm269_vm0, %v848_v20  ;;  %v3336_v30 = vpop.f32.mrb[7].mxu0 }
 0x299   :  { %2214 = vmatprep.mubr.msk.f32.mxu0 %vm269_vm0, %v3272_v40  ;;  %2259 = vmatprep.mubr.msk.f32.mxu1 %vm269_vm0, %v3274_v11 }
 0x29a   :  { %v804_v31 = vpop.permute.xlu1 %803 }
 0x29b   :  { %v856_v32 = vpop.permute.xlu0 %855 }
 0x29c   :  { %2215 = vmatmul.mubr.msk.f32.gmra.mrb[30].mxu0 %vm269_vm0, %v796_v19  ;;  %2260 = vmatmul.mubr.msk.f32.gmra.mrb[20].mxu1 %vm269_vm0, %v852_v26 }
 0x29d   :  { %2217 = vmatprep.mubr.msk.f32.mxu0 %vm269_vm0, %v3276_v46  ;;  %2262 = vmatprep.mubr.msk.f32.mxu1 %vm269_vm0, %v3278_v22 }
 0x29e   :  { %v814_v42 = vpop.permute.xlu1 %813 }
 0x29f   :  { %v860_v33 = vpop.permute.xlu0 %859 }
 0x2a0   :  { %2218 = vmatmul.mubr.msk.f32.gmra.mrb[32].mxu0 %vm269_vm0, %v800_v21  ;;  %2263 = vmatmul.mubr.msk.f32.gmra.mrb[22].mxu1 %vm269_vm0, %v856_v32 }
 0x2a1   :  { %2220 = vmatprep.mubr.msk.f32.mxu0 %vm269_vm0, %v3280_v48  ;;  %2265 = vmatprep.mubr.msk.f32.mxu1 %vm269_vm0, %v3282_v49 }
 0x2a2   :  { %v872_v45 = vpop.permute.xlu1 %871 }
 0x2a3   :  { %v864_v43 = vpop.permute.xlu0 %863 }
 0x2a4   :  { %2221 = vmatmul.mubr.msk.f32.gmra.mrb[34].mxu0 %vm269_vm0, %v804_v31  ;;  %2266 = vmatmul.mubr.msk.f32.gmra.mrb[24].mxu1 %vm269_vm0, %v860_v33 }
 0x2a5   :  { %2223 = vmatprep.mubr.msk.f32.mxu0 %vm269_vm0, %v806_v4  ;;  %2268 = vmatprep.mubr.msk.f32.mxu1 %vm269_vm0, %v3284_v51 }
 0x2a6   :  { %v816_v56 = vpop.permute.xlu1 %815 }
 0x2a7   :  { %v868_v53 = vpop.permute.xlu0 %867 }
 0x2a8   :  { %2224 = vmatmul.mubr.msk.f32.gmra.mrb[36].mxu0 %vm269_vm0, %v3292_v37  ;;  %2269 = vmatmul.mubr.msk.f32.gmra.mrb[26].mxu1 %vm269_vm0, %v864_v43 }
 0x2a9   :  { %2226 = vmatprep.mubr.msk.f32.mxu0 %vm269_vm0, %v3133_v6  ;;  %2271 = vmatprep.mubr.msk.f32.mxu1 %vm269_vm0, %v3286_v0 }
 0x2aa   :  { %v818_v63 = vpop.permute.xlu1 %817 }
 0x2ab   :  { %v874_v57 = vpop.permute.xlu0 %873 }
 0x2ac   :  { %2227 = vmatmul.mubr.msk.f32.gmra.mrb[38].mxu0 %vm269_vm0, %v3140_v59  ;;  %2272 = vmatmul.mubr.msk.f32.gmra.mrb[28].mxu1 %vm269_vm0, %v868_v53 }
 0x2ad   :  { %2229 = vmatprep.mubr.msk.f32.mxu0 %vm269_vm0, %v3304_v9  ;;  %2274 = vmatprep.mubr.msk.f32.mxu1 %vm269_vm0, %v3159_v62 }
 0x2ae   :  { %v884_v59 = vpop.permute.xlu1 %883 }
 0x2af   :  { %v878_v60 = vpop.permute.xlu0 %877 }
 0x2b0   :  { %2230 = vmatmul.mubr.msk.f32.gmra.mrb[40].mxu0 %vm269_vm0, %v814_v42  ;;  %2275 = vmatmul.mubr.msk.f32.gmra.mrb[30].mxu1 %vm269_vm0, %v3155_v61  ;;  %v3494_v42 = vmul.f32 %v3332_v27, %v3332_v27 }
 0x2b1   :  { %2232 = vmatprep.mubr.msk.f32.mxu0 %vm269_vm0, %v816_v56  ;;  %2277 = vmatprep.mubr.msk.f32.mxu1 %vm269_vm0, %v872_v45 }
 0x2b2   :  { %v888_v7 = vpop.permute.xlu1 %887 }
 0x2b3   :  { %v876_v6 = vpop.permute.xlu0 %875 }
 0x2b4   :  { %2233 = vmatmul.mubr.msk.f32.gmra.mrb[42].mxu0 %vm269_vm0, %v818_v63  ;;  %2278 = vmatmul.mubr.msk.f32.gmra.mrb[32].mxu1 %vm269_vm0, %v874_v57  ;;  %v3507_v57 = vmul.f32 %v3336_v30, %v3336_v30 }
 0x2b5   :  { %2280 = vmatprep.mubr.msk.f32.mxu1 %vm269_vm0, %v876_v6 }
 0x2b6   :  { %v892_v10 = vpop.permute.xlu1 %891 }
 0x2b7   :  { %v880_v62 = vpop.permute.xlu0 %879 }
 0x2b8   :  { %2281 = vmatmul.mubr.msk.f32.gmra.mrb[34].mxu1 %vm269_vm0, %v878_v60 }
 0x2b9   :  { %2283 = vmatprep.mubr.msk.f32.mxu1 %vm269_vm0, %v880_v62 }
 0x2ba   :  { %v896_v23 = vpop.permute.xlu1 %895 }
 0x2bb   :  { %v882_v3 = vpop.permute.xlu0 %881 }
 0x2bc   :  { %2284 = vmatmul.mubr.msk.f32.gmra.mrb[36].mxu1 %vm269_vm0, %v882_v3 }
 0x2bd   :  { %2286 = vmatprep.mubr.msk.f32.mxu1 %vm269_vm0, %v884_v59 }
 0x2bf   :  { %v886_v61 = vpop.permute.xlu0 %885 }
 0x2c0   :  { %2287 = vmatmul.mubr.msk.f32.gmra.mrb[38].mxu1 %vm269_vm0, %v886_v61 }
 0x2c1   :  { %2289 = vmatprep.mubr.msk.f32.mxu1 %vm269_vm0, %v888_v7 }
 0x2c3   :  { %v890_v16 = vpop.permute.xlu0 %889 }
 0x2c4   :  { %2290 = vmatmul.mubr.msk.f32.gmra.mrb[40].mxu1 %vm269_vm0, %v890_v16 }
 0x2c5   :  { %2292 = vmatprep.mubr.msk.f32.mxu1 %vm269_vm0, %v892_v10 }
 0x2c7   :  { %v894_v17 = vpop.permute.xlu0 %893 }
 0x2c8   :  { %2293 = vmatmul.mubr.msk.f32.gmra.mrb[42].mxu1 %vm269_vm0, %v894_v17 }
 0x2c9   :  { %2295 = vmatprep.mubr.msk.f32.mxu1 %vm269_vm0, %v896_v23 }
 0x2cb   :  { %v898_v24 = vpop.permute.xlu0 %897 }
 0x2cc   :  { %2296 = vmatmul.mubr.msk.f32.gmra.mrb[44].mxu1 %vm269_vm0, %v898_v24 }
 0x343   :  { %v2183_v25 = vpop.f32.mrb[8].mxu0 }
 0x344   :  { %v3392_v28 = vpop.f32.mrb[9].mxu0  ;;  %v3522_v7 = vmul.f32 %v2183_v25, %v2183_v25 }
 0x345   :  { %v3533_v23 = vmul.f32 %v3392_v28, %v3392_v28 }
 0x347   :  { %v3394_v29 = vpop.f32.mrb[10].mxu0  ;;  %3879 = vst [vmem:[#allocation18_spill] sm:$0xff] %v3533_v23 }
 0x348   :  { %v3396_v34 = vpop.f32.mrb[11].mxu0 }
 0x349   :  { %v3557_v18 = vmul.f32 %v3396_v34, %v3396_v34 }
 0x34b   :  { %v3398_v35 = vpop.f32.mrb[12].mxu0  ;;  %3883 = vst [vmem:[#allocation22_spill] sm:$0xff] %v3557_v18 }
 0x34c   :  { %v3400_v44 = vpop.f32.mrb[13].mxu0  ;;  %v3404_v36 = vmul.f32 %v3398_v35, %v3398_v35 }
 0x34d   :  { %v3408_v38 = vmul.f32 %v3400_v44, %v3400_v44 }
 0x34f   :  { %v3410_v40 = vpop.f32.mrb[14].mxu0  ;;  %v3412_v11 = vpop.f32.mrb[4].mxu1 }
 0x350   :  { %v3416_v22 = vpop.f32.mrb[15].mxu0  ;;  %v3418_v48 = vpop.f32.mrb[5].mxu1  ;;  %v3424_v50 = vmul.f32 %v3410_v40, %v3410_v40 }
 0x351   :  { %v3428_v51 = vmul.f32 %v3416_v22, %v3416_v22 }
 0x353   :  { %v3430_v52 = vpop.f32.mrb[16].mxu0  ;;  %v3432_v0 = vpop.f32.mrb[6].mxu1 }
 0x354   :  { %v3436_v41 = vpop.f32.mrb[17].mxu0  ;;  %v3438_v1 = vpop.f32.mrb[7].mxu1  ;;  %v3444_v54 = vmul.f32 %v3430_v52, %v3430_v52 }
 0x355   :  { %v3448_v37 = vmul.f32 %v3436_v41, %v3436_v41 }
 0x357   :  { %v3450_v47 = vpop.f32.mrb[18].mxu0  ;;  %v3452_v2 = vpop.f32.mrb[8].mxu1 }
 0x358   :  { %v3456_v8 = vpop.f32.mrb[19].mxu0  ;;  %v3458_v9 = vpop.f32.mrb[9].mxu1  ;;  %v3464_v12 = vmul.f32 %v3450_v47, %v3450_v47 }
 0x359   :  { %v3468_v13 = vmul.f32 %v3456_v8, %v3456_v8 }
 0x35b   :  { %v3470_v14 = vpop.f32.mrb[20].mxu0  ;;  %v3472_v39 = vpop.f32.mrb[10].mxu1 }
 0x35c   :  { %v3476_v15 = vpop.f32.mrb[21].mxu0  ;;  %v3478_v19 = vpop.f32.mrb[11].mxu1  ;;  %v3484_v21 = vmul.f32 %v3470_v14, %v3470_v14 }
 0x35d   :  { %v3488_v26 = vmul.f32 %v3476_v15, %v3476_v15 }
 0x35f   :  { %v2204_v31 = vpop.f32.mrb[22].mxu0  ;;  %v3490_v32 = vpop.f32.mrb[12].mxu1 }
 0x360   :  { %v3496_v33 = vmul.f32 %v2204_v31, %v2204_v31  ;;  %v3499_v43 = vmul.f32 %v2204_v31, %v3332_v27  ;;  %v1205_v53 = vpop.f32.mrb[23].mxu0  ;;  %v3503_v56 = vpop.f32.mrb[13].mxu1 }
 0x361   :  { %v3509_v60 = vmul.f32 %v1205_v53, %v1205_v53  ;;  %v3512_v63 = vmul.f32 %v1205_v53, %v3336_v30 }
 0x362   :  { %v1701_v27 = vadd.f32 %v3496_v33, %v3494_v42  ;;  %v1621_v61 = vmul.f32 2.0, %v3499_v43 }
 0x363   :  { %3876 = vst [vmem:[#allocation15_spill] sm:$0xff] %v3512_v63  ;;  %v1700_v59 = vadd.f32 %v3509_v60, %v3507_v57  ;;  %v2207_v62 = vpop.f32.mrb[24].mxu0  ;;  %v3520_v3 = vpop.f32.mrb[14].mxu1  ;;  %v1620_v45 = vmul.f32 2.0, %v3512_v63 }
 0x364   :  { %v3525_v10 = vmul.f32 %v2207_v62, %v2207_v62  ;;  %v3527_v30 = vmul.f32 %v2207_v62, %v2183_v25  ;;  %v1215_v16 = vpop.f32.mrb[25].mxu0  ;;  %v3529_v17 = vpop.f32.mrb[15].mxu1  ;;  %v3548_v62 = vmul.f32 %v3394_v29, %v3394_v29  ;;  %v3564_v5 = vadd.f32 0.0001, %v1701_v27 }
 0x365   :  { %v3537_v31 = vmul.f32 %v1215_v16, %v1215_v16  ;;  %v3542_v6 = vmul.f32 %v1215_v16, %v3392_v28  ;;  %v3559_v28 = vadd.f32 0.0001, %v1621_v61 }
 0x366   :  { %3877 = vst [vmem:[#allocation16_spill] sm:$0xff] %v3525_v10  ;;  %3878 = vst [vmem:[#allocation17_spill] sm:$0xff] %v3527_v30  ;;  %v1703_v53 = vadd.f32 %v3525_v10, %v3522_v7  ;;  %v1623_v16 = vmul.f32 2.0, %v3527_v30 }
 0x367   :  { %3880 = vst [vmem:[#allocation19_spill] sm:$0xff] %v3537_v31  ;;  %3881 = vst [vmem:[#allocation20_spill] sm:$0xff] %v3542_v6  ;;  %v1702_v24 = vadd.f32 %v3537_v31, %v3533_v23  ;;  %v2210_v20 = vpop.f32.mrb[26].mxu0  ;;  %v3553_v58 = vpop.f32.mrb[16].mxu1  ;;  %v1622_v61 = vmul.f32 2.0, %v3542_v6 }
 0x368   :  { %3882 = vst [vmem:[#allocation21_spill] sm:$0xff] %v3548_v62  ;;  %3884 = vst [vmem:[#allocation23_spill] sm:$0xff] %v3559_v28  ;;  %v3562_v25 = vmul.f32 %v2210_v20, %v2210_v20  ;;  %v1225_v4 = vpop.f32.mrb[27].mxu0  ;;  %v3567_v55 = vmul.f32 %v2210_v20, %v3394_v29  ;;  %v3573_v63 = vpop.f32.mrb[17].mxu1  ;;  %v3583_v29 = vadd.f32 0.0001, %v1620_v45 }
 0x369   :  { %3886 = vst [vmem:[#allocation25_spill] sm:$0xff] %v3564_v5  ;;  %v3571_v46 = vmul.f32 %v1225_v4, %v1225_v4  ;;  %v3579_v28 = vmul.f32 %v1225_v4, %v3396_v34  ;;  %v3585_v20 = vadd.f32 0.0001, %v1700_v59  ;;  %v3591_v6 = vadd.f32 0.0001, %v1623_v16 }
 0x36a   :  { %3885 = vst [vmem:[#allocation24_spill] sm:$0xff] %v3562_v25  ;;  %3887 = vst [vmem:[#allocation26_spill] sm:$0xff] %v3567_v55  ;;  %v1705_v30 = vadd.f32 %v3562_v25, %v3548_v62  ;;  %v1625_v62 = vmul.f32 2.0, %v3567_v55  ;;  %v3599_v45 = vadd.f32 0.0001, %v1703_v53 }
 0x36b   :  { %3888 = vst [vmem:[#allocation27_spill] sm:$0xff] %v3571_v46  ;;  %3889 = vst [vmem:[#allocation28_spill] sm:$0xff] %v3579_v28  ;;  %v1704_v49 = vadd.f32 %v3571_v46, %v3557_v18  ;;  %v2213_v23 = vpop.f32.mrb[28].mxu0  ;;  %v3589_v5 = vpop.f32.mrb[18].mxu1  ;;  %v3601_v59 = vadd.f32 0.0001, %v1702_v24 }
 0x36c   :  { %3890 = vst [vmem:[#allocation29_spill] sm:$0xff] %v3583_v29  ;;  %3891 = vst [vmem:[#allocation30_spill] sm:$0xff] %v3589_v5  ;;  %v1547_v10 = vmul.f32 %v2213_v23, %v2213_v23  ;;  %v3595_v34 = vmul.f32 %v2213_v23, %v3398_v35  ;;  %v1235_v4 = vpop.f32.mrb[29].mxu0  ;;  %v3597_v27 = vpop.f32.mrb[19].mxu1  ;;  %v3605_v31 = vadd.f32 0.0001, %v1622_v61 }
 0x36d   :  { %3892 = vst [vmem:[#allocation31_spill] sm:$0xff] %v3591_v6  ;;  %3894 = vst [vmem:[#allocation33_spill] sm:$0xff] %v3601_v59  ;;  %v1546_v18 = vmul.f32 %v1235_v4, %v1235_v4  ;;  %v1624_v16 = vmul.f32 2.0, %v3579_v28  ;;  %v3610_v35 = vmul.f32 %v1235_v4, %v3400_v44  ;;  %v3612_v23 = vadd.f32 0.0001, %v1705_v30 }
 0x36e   :  { %3893 = vst [vmem:[#allocation32_spill] sm:$0xff] %v3595_v34  ;;  %3895 = vst [vmem:[#allocation34_spill] sm:$0xff] %v3605_v31  ;;  %v1707_v6 = vadd.f32 %v1547_v10, %v3404_v36  ;;  %v1627_v53 = vmul.f32 2.0, %v3595_v34  ;;  %v3618_v61 = vadd.f32 0.0001, %v1625_v62 }
 0x36f   :  { %3896 = vst [vmem:[#allocation35_spill] sm:$0xff] %v3610_v35  ;;  %3897 = vst [vmem:[#allocation36_spill] sm:$0xff] %v3612_v23  ;;  %v1706_v24 = vadd.f32 %v1546_v18, %v3408_v38  ;;  %v2216_v29 = vpop.f32.mrb[30].mxu0  ;;  %v2261_v59 = vpop.f32.mrb[20].mxu1  ;;  %v3620_v31 = vadd.f32 0.0001, %v1704_v49 }
 0x370   :  { %3898 = vst [vmem:[#allocation37_spill] sm:$0xff] %v3618_v61  ;;  %v1549_v28 = vmul.f32 %v2216_v29, %v2216_v29  ;;  %v1245_v25 = vpop.f32.mrb[31].mxu0  ;;  %v1626_v44 = vmul.f32 2.0, %v3610_v35  ;;  %v3624_v30 = vmul.f32 %v2216_v29, %v3410_v40  ;;  %v1595_v4 = vsub.f32 %v2261_v59, %v1547_v10  ;;  %v1395_v23 = vpop.f32.mrb[21].mxu1 }
 0x371   :  { %3899 = vst [vmem:[#allocation38_spill] sm:$0xff] %v3620_v31  ;;  %v1548_v34 = vmul.f32 %v1245_v25, %v1245_v25  ;;  %v3626_v5 = vadd.f32 0.0001, %v1624_v16  ;;  %v3630_v46 = vmul.f32 %v1245_v25, %v3416_v22  ;;  %v1594_v62 = vsub.f32 %v1395_v23, %v1546_v18 }
 0x372   :  { %3900 = vst [vmem:[#allocation39_spill] sm:$0xff] %v3624_v30  ;;  %v1709_v55 = vadd.f32 %v1549_v28, %v3424_v50  ;;  %v3632_v49 = vadd.f32 0.0001, %v1627_v53  ;;  %v1723_v61 = vadd.f32 0.0001, %v1707_v6  ;;  %v3904_v31 = vsub.f32 %v3412_v11, %v3404_v36 }
 0x373   :  { %3901 = vst [vmem:[#allocation40_spill] sm:$0xff] %v3626_v5  ;;  %3902 = vst [vmem:[#allocation41_spill] sm:$0xff] %v3630_v46  ;;  %v1708_v40 = vadd.f32 %v1548_v34, %v3428_v51  ;;  %v2219_v10 = vpop.f32.mrb[32].mxu0  ;;  %v2264_v29 = vpop.f32.mrb[22].mxu1  ;;  %v1722_v59 = vadd.f32 0.0001, %v1706_v24  ;;  %v3905_v5 = vsub.f32 %v3418_v48, %v3408_v38 }
 0x374   :  { %3903 = vst [vmem:[#allocation42_spill] sm:$0xff] %v3632_v49  ;;  %v1739_v35 = vadd.f32 %v1595_v4, %v3904_v31  ;;  %v1629_v16 = vmul.f32 2.0, %v3624_v30  ;;  %v1551_v25 = vmul.f32 %v2219_v10, %v2219_v10  ;;  %v1255_v18 = vpop.f32.mrb[33].mxu0  ;;  %v1405_v23 = vpop.f32.mrb[23].mxu1  ;;  %v3642_v53 = vadd.f32 0.0001, %v1626_v44 }
 0x375   :  { %v1738_v22 = vadd.f32 %v1594_v62, %v3905_v5  ;;  %v1628_v36 = vmul.f32 2.0, %v3630_v46  ;;  %v3646_v11 = vmul.f32 %v2219_v10, %v3430_v52  ;;  %v1725_v31 = vadd.f32 0.0001, %v1709_v55 }
 0x376   :  { %3906 = vst [vmem:[#allocation43_spill] sm:$0xff] %v3642_v53  ;;  %v1755_v6 = vadd.f32 0.0009, %v1739_v35  ;;  %v1711_v24 = vadd.f32 %v1551_v25, %v3444_v54  ;;  %v1597_v49 = vsub.f32 %v2264_v29, %v1549_v28  ;;  %v1550_v48 = vmul.f32 %v1255_v18, %v1255_v18 }
 0x377   :  { %v1754_v4 = vadd.f32 0.0009, %v1738_v22  ;;  %v1631_v38 = vmul.f32 2.0, %v3646_v11  ;;  %v3651_v5 = vmul.f32 %v1255_v18, %v3436_v41  ;;  %v2222_v44 = vpop.f32.mrb[34].mxu0  ;;  %v2267_v62 = vpop.f32.mrb[24].mxu1  ;;  %v3907_v52 = vsub.f32 %v3432_v0, %v3424_v50 }
 0x378   :  { %v1771_v30 = vmul.f32 %v1755_v6, %v1723_v61  ;;  %v3653_v35 = vadd.f32 0.0001, %v1629_v16  ;;  %v1596_v10 = vsub.f32 %v1405_v23, %v1548_v34  ;;  %v1265_v22 = vpop.f32.mrb[35].mxu0  ;;  %v1415_v46 = vpop.f32.mrb[25].mxu1  ;;  %v3658_v28 = vadd.f32 0.0001, %v1628_v36 }
 0x379   :  { %v1770_v53 = vmul.f32 %v1754_v4, %v1722_v59  ;;  %v1741_v55 = vadd.f32 %v1597_v49, %v3907_v52  ;;  %v1724_v61 = vadd.f32 0.0001, %v1708_v40  ;;  %v1727_v29 = vadd.f32 0.0001, %v1711_v24 }
 0x37a   :  { %3908 = vst [vmem:[#allocation44_spill] sm:$0xff] %v3658_v28  ;;  %v1710_v6 = vadd.f32 %v1550_v48, %v3448_v37  ;;  %v1630_v18 = vmul.f32 2.0, %v3651_v5  ;;  %v3909_v16 = vsub.f32 %v3438_v1, %v3428_v51  ;;  %v1553_v4 = vmul.f32 %v2222_v44, %v2222_v44 }
 0x37b   :  { %v1757_v41 = vadd.f32 0.0009, %v1741_v55  ;;  %2506 = vrcp.f32 %v1771_v30  ;;  %v3665_v50 = vadd.f32 0.0001, %v1631_v38  ;;  %v3668_v0 = vmul.f32 %v2222_v44, %v3450_v47  ;;  %v2225_v49 = vpop.f32.mrb[36].mxu0  ;;  %v2270_v40 = vpop.f32.mrb[26].mxu1 }
 0x37c   :  { %v1740_v59 = vadd.f32 %v1596_v10, %v3909_v16  ;;  %v1599_v34 = vsub.f32 %v2267_v62, %v1551_v25  ;;  %v1713_v24 = vadd.f32 %v1553_v4, %v3464_v12  ;;  %v1552_v52 = vmul.f32 %v1265_v22, %v1265_v22  ;;  %v1275_v55 = vpop.f32.mrb[37].mxu0  ;;  %v1425_v28 = vpop.f32.mrb[27].mxu1 }
 0x37d   :  { %v1773_v23 = vmul.f32 %v1757_v41, %v1725_v31  ;;  %v1633_v51 = vmul.f32 2.0, %v3668_v0  ;;  %v3910_v1 = vsub.f32 %v3452_v2, %v3444_v54  ;;  %v3676_v38 = vmul.f32 %v1265_v22, %v3456_v8 }
 0x37e   :  { %v1756_v36 = vadd.f32 0.0009, %v1740_v59  ;;  %v1598_v47 = vsub.f32 %v1415_v46, %v1550_v48  ;;  %2508 = vrcp.f32 %v1770_v53  ;;  %v3678_v25 = vadd.f32 0.0001, %v1630_v18 }
 0x37f   :  { %v1743_v30 = vadd.f32 %v1599_v34, %v3910_v1  ;;  %v1712_v44 = vadd.f32 %v1552_v52, %v3468_v13  ;;  %2510 = vrcp.f32 %v1773_v23  ;;  %v1726_v62 = vadd.f32 0.0001, %v1710_v6  ;;  %v2228_v59 = vpop.f32.mrb[38].mxu0  ;;  %v2273_v53 = vpop.f32.mrb[28].mxu1 }
 0x380   :  { %v1772_v31 = vmul.f32 %v1756_v36, %v1724_v61  ;;  %v3911_v41 = vsub.f32 %v3458_v9, %v3448_v37  ;;  %v1729_v54 = vadd.f32 0.0001, %v1713_v24  ;;  %v1632_v2 = vmul.f32 2.0, %v3676_v38  ;;  %v1285_v48 = vpop.f32.mrb[39].mxu0  ;;  %v1435_v34 = vpop.f32.mrb[29].mxu1 }
 0x381   :  { %v1759_v10 = vadd.f32 0.0009, %v1743_v30  ;;  %v1555_v8 = vmul.f32 %v2225_v49, %v2225_v49  ;;  %v3686_v46 = vmul.f32 %v2225_v49, %v3470_v14  ;;  %v3688_v22 = vadd.f32 0.0001, %v1633_v51 }
 0x382   :  { %v1742_v16 = vadd.f32 %v1598_v47, %v3911_v41  ;;  %v1601_v6 = vsub.f32 %v2270_v40, %v1553_v4  ;;  %2512 = vrcp.f32 %v1772_v31  ;;  %v1554_v9 = vmul.f32 %v1275_v55, %v1275_v55 }
 0x383   :  { %v1775_v61 = vmul.f32 %v1759_v10, %v1727_v29  ;;  %v1715_v37 = vadd.f32 %v1555_v8, %v3484_v21  ;;  %v3692_v23 = vmul.f32 %v1275_v55, %v3476_v15  ;;  %v1728_v36 = vadd.f32 0.0001, %v1712_v44  ;;  %v2231_v51 = vpop.f32.mrb[40].mxu0  ;;  %v2276_v30 = vpop.f32.mrb[30].mxu1 }
 0x384   :  { %v1758_v18 = vadd.f32 0.0009, %v1742_v16  ;;  %v3912_v14 = vsub.f32 %v3472_v39, %v3464_v12  ;;  %v1600_v1 = vsub.f32 %v1425_v28, %v1552_v52  ;;  %v3697_v29 = vadd.f32 0.0001, %v1632_v2  ;;  %v1295_v47 = vpop.f32.mrb[41].mxu0  ;;  %v1445_v52 = vpop.f32.mrb[31].mxu1 }
 0x385   :  { %2514 = vrcp.f32 %v1775_v61  ;;  %v3700_v4 = vmul.f32 2.0, %v3686_v46  ;;  %v1714_v40 = vadd.f32 %v1554_v9, %v3488_v26  ;;  %v3703_v15 = vpop.eup %2506  ;;  %v1731_v55 = vadd.f32 0.0001, %v1715_v37 }
 0x386   :  { %v1774_v24 = vmul.f32 %v1758_v18, %v1726_v62  ;;  %v1745_v49 = vadd.f32 %v1601_v6, %v3912_v14  ;;  %v3913_v12 = vsub.f32 %v3478_v19, %v3468_v13  ;;  %v1573_v28 = vsub.f32 %v2228_v59, %v3494_v42 }
 0x387   :  { %v1730_v44 = vadd.f32 0.0001, %v1714_v40  ;;  %v1603_v62 = vsub.f32 %v2273_v53, %v1555_v8  ;;  %v1572_v10 = vsub.f32 %v1285_v48, %v3507_v57  ;;  %v3914_v2 = vsub.f32 %v3520_v3, %v3496_v33  ;;  %v2234_v6 = vpop.f32.mrb[42].mxu0  ;;  %v2279_v37 = vpop.f32.mrb[32].mxu1 }
 0x388   :  { %v1761_v31 = vadd.f32 0.0009, %v1745_v49  ;;  %v1744_v39 = vadd.f32 %v1600_v1, %v3913_v12  ;;  %2516 = vrcp.f32 %v1774_v24  ;;  %v1602_v18 = vsub.f32 %v1435_v34, %v1554_v9  ;;  %v3713_v14 = vpop.eup %2508  ;;  %v1305_v8 = vpop.f32.mrb[43].mxu0 }
 0x389   :  { %v1733_v61 = vadd.f32 %v3914_v2, %v1573_v28  ;;  %v3915_v13 = vsub.f32 %v3490_v32, %v3484_v21  ;;  %v3916_v42 = vsub.f32 %v3529_v17, %v3509_v60  ;;  %v1575_v57 = vsub.f32 %v2231_v51, %v3522_v7  ;;  %v1455_v33 = vpop.f32.mrb[33].mxu1  ;;  %v3723_v3 = vpop.eup %2510  ;;  %v3918_v60 = vld [vmem:[#allocation16_spill] sm:$0xff]  ;;  %v3921_v51 = vld [vmem:[#allocation18_spill] sm:$0xff] }
 0x38a   :  { %v1777_v41 = vmul.f32 %v1761_v31, %v1729_v54  ;;  %v1760_v16 = vadd.f32 0.0009, %v1744_v39  ;;  %v1605_v54 = vsub.f32 %v2276_v30, %v3499_v43  ;;  %v3917_v34 = vsub.f32 %v3503_v56, %v3488_v26  ;;  %v3920_v43 = vld [vmem:[#allocation25_spill] sm:$0xff] }
 0x38b   :  { %v1747_v19 = vadd.f32 %v1603_v62, %v3915_v13  ;;  %v1732_v59 = vadd.f32 %v3916_v42, %v1572_v10  ;;  %v1749_v48 = vadd.f32 0.0009, %v1733_v61  ;;  %v3919_v17 = vsub.f32 %v3553_v58, %v3918_v60  ;;  %v2282_v40 = vpop.f32.mrb[34].mxu1  ;;  %v3922_v58 = vld [vmem:[#allocation19_spill] sm:$0xff]  ;;  %v3927_v42 = vld [vmem:[#allocation17_spill] sm:$0xff] }
 0x38c   :  { %2518 = vrcp.f32 %v1777_v41  ;;  %v1776_v53 = vmul.f32 %v1760_v16, %v1728_v36  ;;  %v1746_v21 = vadd.f32 %v1602_v18, %v3917_v34  ;;  %v1653_v7 = vmul.f32 2.0, %v1605_v54  ;;  %v3733_v36 = vpop.eup %2512  ;;  %v1465_v39 = vpop.f32.mrb[35].mxu1  ;;  %v3924_v41 = vld [vmem:[#allocation15_spill] sm:$0xff]  ;;  %v3926_v18 = vld [vmem:[#allocation21_spill] sm:$0xff] }
 0x38d   :  { %v1763_v32 = vadd.f32 0.0009, %v1747_v19  ;;  %v1748_v9 = vadd.f32 0.0009, %v1732_v59  ;;  %v1735_v24 = vadd.f32 %v3919_v17, %v1575_v57  ;;  %v1765_v49 = vmul.f32 %v1749_v48, %v3920_v43  ;;  %v3925_v61 = vld [vmem:[#allocation23_spill] sm:$0xff]  ;;  %v3931_v48 = vld [vmem:[#allocation22_spill] sm:$0xff] }
 0x38e   :  { %2520 = vrcp.f32 %v1776_v53  ;;  %v1762_v1 = vadd.f32 0.0009, %v1746_v21  ;;  %v1574_v30 = vsub.f32 %v1295_v47, %v3921_v51  ;;  %v1669_v12 = vadd.f32 0.0009, %v1653_v7 }
 0x38f   :  { %v1779_v31 = vmul.f32 %v1763_v32, %v1731_v55  ;;  %v1764_v26 = vmul.f32 %v1748_v9, %v3585_v20  ;;  %v1751_v56 = vadd.f32 0.0009, %v1735_v24  ;;  %2522 = vrcp.f32 %v1765_v49  ;;  %v3740_v2 = vpop.eup %2514  ;;  %v2285_v59 = vpop.f32.mrb[36].mxu1 }
 0x390   :  { %v1778_v28 = vmul.f32 %v1762_v1, %v1730_v44  ;;  %v3923_v62 = vsub.f32 %v3573_v63, %v3922_v58  ;;  %v1604_v16 = vsub.f32 %v1445_v52, %v3924_v41  ;;  %v1685_v55 = vmul.f32 %v1669_v12, %v3925_v61  ;;  %v3928_v63 = vld [vmem:[#allocation30_spill] sm:$0xff]  ;;  %v3929_v52 = vld [vmem:[#allocation24_spill] sm:$0xff]  ;;  %v1475_v32 = vpop.f32.mrb[37].mxu1 }
 0x391   :  { %2524 = vrcp.f32 %v1779_v31  ;;  %v1767_v47 = vmul.f32 %v1751_v56, %v3599_v45  ;;  %v1577_v20 = vsub.f32 %v2234_v6, %v3926_v18  ;;  %v1607_v44 = vsub.f32 %v2279_v37, %v3927_v42  ;;  %v3932_v45 = vld [vmem:[#allocation20_spill] sm:$0xff]  ;;  %v3933_v6 = vld [vmem:[#allocation33_spill] sm:$0xff]  ;;  %v3934_v37 = vld [vmem:[#allocation27_spill] sm:$0xff] }
 0x392   :  { %v1734_v10 = vadd.f32 %v3923_v62, %v1574_v30  ;;  %2526 = vrcp.f32 %v1764_v26  ;;  %v1652_v19 = vmul.f32 2.0, %v1604_v16  ;;  %v3746_v57 = vpop.eup %2516  ;;  %v3930_v54 = vsub.f32 %v3928_v63, %v3929_v52  ;;  %v3936_v1 = vld [vmem:[#allocation26_spill] sm:$0xff]  ;;  %v3938_v26 = vld [vmem:[#allocation28_spill] sm:$0xff] }
 0x393   :  { %2528 = vrcp.f32 %v1778_v28  ;;  %v1576_v34 = vsub.f32 %v1305_v8, %v3931_v48  ;;  %v1606_v21 = vsub.f32 %v1455_v33, %v3932_v45  ;;  %v1655_v17 = vmul.f32 2.0, %v1607_v44  ;;  %v3937_v8 = vld [vmem:[#allocation29_spill] sm:$0xff]  ;;  %v2288_v12 = vpop.f32.mrb[38].mxu1  ;;  %v3939_v28 = vld [vmem:[#allocation36_spill] sm:$0xff]  ;;  %v3943_v42 = vld [vmem:[#allocation38_spill] sm:$0xff] }
 0x394   :  { %v1750_v13 = vadd.f32 0.0009, %v1734_v10  ;;  %v1737_v53 = vadd.f32 %v3930_v54, %v1577_v20  ;;  %2530 = vrcp.f32 %v1767_v47  ;;  %v1668_v60 = vadd.f32 0.0009, %v1652_v19  ;;  %v1485_v16 = vpop.f32.mrb[39].mxu1  ;;  %v3940_v47 = vld [vmem:[#allocation31_spill] sm:$0xff] }
 0x395   :  { %v3935_v7 = vsub.f32 %v3597_v27, %v3934_v37  ;;  %v1654_v49 = vmul.f32 2.0, %v1606_v21  ;;  %v1609_v51 = vsub.f32 %v2282_v40, %v3936_v1  ;;  %v1671_v33 = vadd.f32 0.0009, %v1655_v17  ;;  %v3941_v18 = vld [vmem:[#allocation32_spill] sm:$0xff]  ;;  %v3944_v44 = vld [vmem:[#allocation34_spill] sm:$0xff]  ;;  %v3945_v45 = vld [vmem:[#allocation39_spill] sm:$0xff] }
 0x396   :  { %v1766_v9 = vmul.f32 %v1750_v13, %v3933_v6  ;;  %v1753_v24 = vadd.f32 0.0009, %v1737_v53  ;;  %v3758_v30 = vpop.eup %2518  ;;  %v1684_v31 = vmul.f32 %v1668_v60, %v3937_v8  ;;  %v1608_v56 = vsub.f32 %v1465_v39, %v3938_v26  ;;  %v3942_v13 = vld [vmem:[#allocation35_spill] sm:$0xff] }
 0x397   :  { %v1736_v43 = vadd.f32 %v3935_v7, %v1576_v34  ;;  %v1670_v10 = vadd.f32 0.0009, %v1654_v49  ;;  %v1657_v41 = vmul.f32 2.0, %v1609_v51  ;;  %v3766_v61 = vmul.f32 %v1671_v33, %v3940_v47  ;;  %v2291_v6 = vpop.f32.mrb[40].mxu1 }
 0x398   :  { %2532 = vrcp.f32 %v1766_v9  ;;  %v1769_v58 = vmul.f32 %v1753_v24, %v3939_v28  ;;  %v3763_v27 = vpop.eup %2520  ;;  %v1656_v40 = vmul.f32 2.0, %v1608_v56  ;;  %v1611_v20 = vsub.f32 %v2285_v59, %v3941_v18  ;;  %v3946_v59 = vld [vmem:[#allocation37_spill] sm:$0xff]  ;;  %v1495_v37 = vpop.f32.mrb[41].mxu1 }
 0x399   :  { %v1752_v62 = vadd.f32 0.0009, %v1736_v43  ;;  %v1610_v19 = vsub.f32 %v1475_v32, %v3942_v13  ;;  %v3772_v63 = vmul.f32 %v1670_v10, %v3944_v44  ;;  %v1673_v52 = vadd.f32 0.0009, %v1657_v41  ;;  %v2523_v54 = vpop.eup %2522  ;;  %v3947_v32 = vld [vmem:[#allocation41_spill] sm:$0xff]  ;;  %v3948_v43 = vld [vmem:[#allocation40_spill] sm:$0xff] }
 0x39a   :  { %2534 = vrcp.f32 %v1769_v58  ;;  %v1672_v53 = vadd.f32 0.0009, %v1656_v40  ;;  %v1659_v48 = vmul.f32 2.0, %v1611_v20  ;;  %v1613_v21 = vsub.f32 %v2288_v12, %v3945_v45  ;;  %v3950_v41 = vld [vmem:[#allocation43_spill] sm:$0xff] }
 0x39b   :  { %v1768_v39 = vmul.f32 %v1752_v62, %v3943_v42  ;;  %v1658_v34 = vmul.f32 2.0, %v1610_v19  ;;  %v3775_v9 = vpop.eup %2524  ;;  %v3778_v60 = vmul.f32 %v1673_v52, %v3946_v59  ;;  %v1612_v17 = vsub.f32 %v1485_v16, %v3947_v32  ;;  %v3949_v62 = vld [vmem:[#allocation42_spill] sm:$0xff]  ;;  %v2294_v47 = vpop.f32.mrb[42].mxu1 }
 0x39c   :  { %v1615_v24 = vsub.f32 %v2291_v6, %v3646_v11  ;;  %v2527_v7 = vpop.eup %2526  ;;  %v3783_v49 = vmul.f32 %v1672_v53, %v3948_v43  ;;  %v1675_v1 = vadd.f32 0.0009, %v1659_v48  ;;  %v1661_v8 = vmul.f32 2.0, %v1613_v21  ;;  %v1505_v42 = vpop.f32.mrb[43].mxu1 }
 0x39d   :  { %2536 = vrcp.f32 %v1768_v39  ;;  %v1674_v51 = vadd.f32 0.0009, %v1658_v34  ;;  %v3785_v33 = vpop.eup %2528  ;;  %v1660_v26 = vmul.f32 2.0, %v1612_v17  ;;  %v1614_v12 = vsub.f32 %v1495_v37, %v3651_v5 }
 0x39e   :  { %v1663_v56 = vmul.f32 2.0, %v1615_v24  ;;  %v1783_v28 = vmul.f32 %v2523_v54, %v1685_v55  ;;  %v2531_v58 = vpop.eup %2530  ;;  %v1691_v10 = vmul.f32 %v1675_v1, %v3949_v62  ;;  %v1677_v16 = vadd.f32 0.0009, %v1661_v8  ;;  %v3951_v54 = vld [vmem:[#allocation44_spill] sm:$0xff] }
 0x39f   :  { %v1690_v11 = vmul.f32 %v1674_v51, %v3950_v41  ;;  %v1781_v40 = vmul.f32 %v2527_v7, %v1684_v31  ;;  %v1676_v18 = vadd.f32 0.0009, %v1660_v26  ;;  %v1662_v13 = vmul.f32 2.0, %v1614_v12 }
 0x3a0   :  { %v1679_v20 = vadd.f32 0.0009, %v1663_v56  ;;  %v1617_v19 = vsub.f32 %v2294_v47, %v3668_v0  ;;  %v1693_v44 = vmul.f32 %v1677_v16, %v3653_v35  ;;  %v1795_v5 = vmul.f32 %v3703_v15, %v1691_v10  ;;  %v2297_v35 = vpop.f32.mrb[44].mxu1 }
 0x3a1   :  { %v1793_v55 = vmul.f32 %v3713_v14, %v1690_v11  ;;  %v1616_v52 = vsub.f32 %v1505_v42, %v3676_v38  ;;  %v1692_v53 = vmul.f32 %v1676_v18, %v3951_v54  ;;  %v1678_v31 = vadd.f32 0.0009, %v1662_v13  ;;  %v1515_v32 = vpop.f32.mrb[45].mxu1 }
 0x3a2   :  { %v2533_v39 = vpop.eup %2532  ;;  %v1695_v48 = vmul.f32 %v1679_v20, %v3665_v50  ;;  %v1665_v34 = vmul.f32 2.0, %v1617_v19  ;;  %v1833_v45 = vsel %vm269_vm0, %v1795_v5, 0.0  ;;  %v1799_v6 = vmul.f32 %v3723_v3, %v1693_v44 }
 0x3a3   :  { %v1830_v0 = vsel %vm269_vm0, %v1793_v55, 0.0  ;;  %v1664_v21 = vmul.f32 2.0, %v1616_v52  ;;  %v1634_v15 = vmul.f32 2.0, %v3692_v23  ;;  %v1694_v14 = vmul.f32 %v1678_v31, %v3678_v25  ;;  %1834 = vadd.xlane.f32.xlu1 %v1833_v45 }
 0x3a4   :  { %v2535_v59 = vpop.eup %2534  ;;  %v1681_v38 = vadd.f32 0.0009, %v1665_v34  ;;  %1831 = vadd.xlane.f32.xlu0 %v1830_v0  ;;  %v1619_v50 = vsub.f32 %v2297_v35, %v3686_v46  ;;  %v1839_v24 = vsel %vm269_vm0, %v1799_v6, 0.0  ;;  %v1815_v37 = vsel %vm269_vm0, %v1783_v28, 0.0 }
 0x3a5   :  { %v1680_v17 = vadd.f32 0.0009, %v1664_v21  ;;  %v1618_v7 = vsub.f32 %v1515_v32, %v3692_v23  ;;  %v1797_v51 = vmul.f32 %v3733_v36, %v1692_v53  ;;  %v1803_v25 = vmul.f32 %v3740_v2, %v1695_v48 }
 0x3a6   :  { %v1697_v43 = vmul.f32 %v1681_v38, %v3688_v22  ;;  %v1667_v1 = vmul.f32 2.0, %v1619_v50  ;;  %v1801_v46 = vmul.f32 %v3746_v57, %v1694_v14  ;;  %v1787_v56 = vmul.f32 %v2531_v58, %v3766_v61 }
 0x3a7   :  { %v2537_v3 = vpop.eup %2536  ;;  %v1696_v8 = vmul.f32 %v1680_v17, %v3697_v29  ;;  %v1666_v26 = vmul.f32 2.0, %v1618_v7  ;;  %v1651_v12 = vadd.f32 0.0001, %v3700_v4  ;;  %1840 = vadd.xlane.f32.xlu1 %v1839_v24  ;;  %v1785_v23 = vmul.f32 %v2533_v39, %v3772_v63 }
 0x3a8   :  { %v1683_v28 = vadd.f32 0.0009, %v1667_v1  ;;  %1816 = vadd.xlane.f32.xlu0 %v1815_v37  ;;  %v1650_v22 = vadd.f32 0.0001, %v1634_v15  ;;  %v1791_v36 = vmul.f32 %v2535_v59, %v3778_v60  ;;  %v1789_v2 = vmul.f32 %v2537_v3, %v3783_v49 }
 0x3a9   :  { %v1682_v62 = vadd.f32 0.0009, %v1666_v26  ;;  %v1807_v29 = vmul.f32 %v3758_v30, %v1697_v43  ;;  %v1812_v57 = vsel %vm269_vm0, %v1781_v40, 0.0  ;;  %v1836_v61 = vsel %vm269_vm0, %v1797_v51, 0.0 }
 0x3aa   :  { %v1699_v10 = vmul.f32 %v1683_v28, %v1651_v12  ;;  %v1805_v4 = vmul.f32 %v3763_v27, %v1696_v8  ;;  %v1845_v60 = vsel %vm269_vm0, %v1803_v25, 0.0  ;;  %v1842_v11 = vsel %vm269_vm0, %v1801_v46, 0.0 }
 0x3ab   :  { %v1698_v41 = vmul.f32 %v1682_v62, %v1650_v22  ;;  %1813 = vadd.xlane.f32.xlu1 %v1812_v57  ;;  %v1821_v30 = vsel %vm269_vm0, %v1787_v56, 0.0  ;;  %v1818_v49 = vsel %vm269_vm0, %v1785_v23, 0.0  ;;  %v1827_v27 = vsel %vm269_vm0, %v1791_v36, 0.0 }
 0x3ac   :  { %1837 = vadd.xlane.f32.xlu0 %v1836_v61  ;;  %v1811_v63 = vmul.f32 %v3775_v9, %v1699_v10  ;;  %v1824_v16 = vsel %vm269_vm0, %v1789_v2, 0.0  ;;  %v1851_v9 = vsel %vm269_vm0, %v1807_v29, 0.0  ;;  %v1876_v13 = vlaneseq }
 0x3ad   :  { %v1809_v58 = vmul.f32 %v3785_v33, %v1698_v41  ;;  %v1848_v33 = vsel %vm269_vm0, %v1805_v4, 0.0 }
 0x3ae   :  { %v1857_v47 = vsel %vm269_vm0, %v1811_v63, 0.0  ;;  %v1877_v39 = vand.u32 127, %v1876_v13  ;;  %v1879_v55 = vshrl.u32 %v1876_v13, 7 }
 0x3af   :  { %1846 = vadd.xlane.f32.xlu1 %v1845_v60  ;;  %v1854_v40 = vsel %vm269_vm0, %v1809_v58, 0.0 }
 0x3b0   :  { %1843 = vadd.xlane.f32.xlu0 %v1842_v11  ;;  %v1882_v52 = vadd.s32 4294967288, %v1877_v39  ;;  %v1880_v48 = vsub.s32 %v1877_v39, %v1879_v55 }
 0x3b2   :  { %v1885_v31 = vsub.s32 %v1882_v52, %v1879_v55 }
 0x3b3   :  { %1822 = vadd.xlane.f32.xlu1 %v1821_v30 }
 0x3b4   :  { %1819 = vadd.xlane.f32.xlu0 %v1818_v49 }
 0x3b7   :  { %1828 = vadd.xlane.f32.xlu1 %v1827_v27 }
 0x3b8   :  { %1825 = vadd.xlane.f32.xlu0 %v1824_v16 }
 0x3bb   :  { %1852 = vadd.xlane.f32.xlu1 %v1851_v9 }
 0x3bc   :  { %1849 = vadd.xlane.f32.xlu0 %v1848_v33 }
 0x3bf   :  { %1858 = vadd.xlane.f32.xlu1 %v1857_v47 }
 0x3c0   :  { %1855 = vadd.xlane.f32.xlu0 %v1854_v40 }
 0x430   :  { %v1835_v18 = vpop.xlane.xlu1 %1834 }
 0x431   :  { %v1832_v20 = vpop.xlane.xlu0 %1831  ;;  %v1914_v35 = vrot.slane %v1835_v18, %v1885_v31 }
 0x432   :  { %v1910_v59 = vrot.slane %v1832_v20, %v1880_v48 }
 0x434   :  { %v1841_v19 = vpop.xlane.xlu1 %1840  ;;  %v1915_v25 = vsel %vm1887_vm7, %v1914_v35, %v1910_v59 }
 0x435   :  { %v1817_v42 = vpop.xlane.xlu0 %1816  ;;  %v1923_v37 = vrot.slane %v1841_v19, %v1885_v31 }
 0x436   :  { %v1886_v15 = vrot.slane %v1817_v42, %v1885_v31 }
 0x438   :  { %v1814_v44 = vpop.xlane.xlu1 %1813 }
 0x439   :  { %v1838_v5 = vpop.xlane.xlu0 %1837  ;;  %v1881_v6 = vrot.slane %v1814_v44, %v1880_v48 }
 0x43a   :  { %v1919_v32 = vrot.slane %v1838_v5, %v1880_v48 }
 0x43b   :  { %v1888_v7 = vsel %vm1887_vm7, %v1886_v15, %v1881_v6 }
 0x43c   :  { %v1847_v54 = vpop.xlane.xlu1 %1846  ;;  %v1924_v56 = vsel %vm1887_vm7, %v1923_v37, %v1919_v32 }
 0x43d   :  { %v1844_v53 = vpop.xlane.xlu0 %1843  ;;  %v1932_v3 = vrot.slane %v1847_v54, %v1885_v31 }
 0x43e   :  { %v1928_v43 = vrot.slane %v1844_v53, %v1880_v48 }
 0x440   :  { %v1823_v34 = vpop.xlane.xlu1 %1822  ;;  %v1933_v62 = vsel %vm1887_vm7, %v1932_v3, %v1928_v43 }
 0x441   :  { %v1820_v45 = vpop.xlane.xlu0 %1819  ;;  %v1896_v0 = vrot.slane %v1823_v34, %v1885_v31 }
 0x442   :  { %v1892_v21 = vrot.slane %v1820_v45, %v1880_v48 }
 0x444   :  { %v1897_v14 = vsel %vm1887_vm7, %v1896_v0, %v1892_v21  ;;  %v1829_v38 = vpop.xlane.xlu1 %1828 }
 0x445   :  { %v1826_v50 = vpop.xlane.xlu0 %1825  ;;  %v1905_v17 = vrot.slane %v1829_v38, %v1885_v31  ;;  %v1953_v1 = vsel %vm1952_vm8, %v1897_v14, %v1888_v7 }
 0x446   :  { %v1901_v24 = vrot.slane %v1826_v50, %v1880_v48 }
 0x448   :  { %v1906_v51 = vsel %vm1887_vm7, %v1905_v17, %v1901_v24  ;;  %v1853_v26 = vpop.xlane.xlu1 %1852 }
 0x449   :  { %v1955_v8 = vsel %vm1954_vm9, %v1906_v51, %v1953_v1  ;;  %v1850_v46 = vpop.xlane.xlu0 %1849  ;;  %v1941_v28 = vrot.slane %v1853_v26, %v1885_v31 }
 0x44a   :  { %v1957_v12 = vsel %vm1956_vm10, %v1915_v25, %v1955_v8  ;;  %v1937_v23 = vrot.slane %v1850_v46, %v1880_v48 }
 0x44b   :  { %v1959_v22 = vsel %vm1958_vm11, %v1924_v56, %v1957_v12 }
 0x44c   :  { %v1942_v36 = vsel %vm1887_vm7, %v1941_v28, %v1937_v23  ;;  %v1859_v10 = vpop.xlane.xlu1 %1858  ;;  %v1961_v29 = vsel %vm1960_vm12, %v1933_v62, %v1959_v22 }
 0x44d   :  { %v1856_v2 = vpop.xlane.xlu0 %1855  ;;  %v1950_v41 = vrot.slane %v1859_v10, %v1885_v31  ;;  %v1963_v4 = vsel %vm1962_vm13, %v1942_v36, %v1961_v29 }
 0x44e   :  { %v1946_v57 = vrot.slane %v1856_v2, %v1880_v48 }
 0x450   :  { %v1951_v61 = vsel %vm1887_vm7, %v1950_v41, %v1946_v57 }
 0x451   :  { %v1965_v63 = vsel %vm1964_vm14, %v1951_v61, %v1963_v4 }
 0x452   :  { %v1967_v58 = vsel %vm269_vm0, %v1965_v63, 0.0 }
 0x453   :  { %1968 = vadd.xlane.f32.xlu0 %v1967_v58 }
 0x4e0   :  { %v1969_v60 = vpop.xlane.xlu0 %1968 }
 0x4e1   :  { %v1974_v11 = vrot.slane %v1969_v60, %v1880_v48 }
 0x4e3   :  { %1977 = vst.msk [vmem:[#allocation10] sm:$0x1] %vm1976_vm15, %v1974_v11 }
 0x4e4   :  { %2637 = shalt.err (!%p2634_p8)
}
 0x4e5   :  { %s2638_s22 = scalar_lea.hbm %s3858_s4, 16 }
 0x4e6   :  { %p2639_p9 = scmp.ne.s32.totalorder %s3858_s4, %s2638_s22  ;;  %p2642_p10 = scmp.lt.u32.totalorder %s2638_s22, %s3858_s4 }
 0x4e8   :  { %p2644_p11 = pnand %p2642_p10, %p2639_p9 }
 0x4ea   :  { %2647 = shalt.err (!%p2644_p11)
}
 0x4eb   :  { %1987 = dma.vmem_to_hbm [thread:$0]  %s1985_s16, 16, %s3858_s4, [#allocation4]  }
 0x4ec   :  { %2654 = dma.done.wait [#allocation4], 16  }
 0x4ed   :  { %2655 = vsyncadd [#allocation4], 4294967280 }
 0x4ee   :  { %1991 = vsyncpa [#allocation3], 1 }
 0x4ef   :  { %1992 = vsyncpa [#allocation6], 1 }
 0x4f0   :  { %1993 = vsyncpa [#allocation9], 1 }
 0x4f1   :  { %1994 = vsyncpa [#allocation4], 1 }

</bundles_post_ra>
